<compile_context>
chip_gen: v7x
topology: tpu7x:2x2x1
jax: 0.10.0
libtpu: 0.0.40
codegen_flags: <defaults>
</compile_context>

<pallas_src>
import jax
import jax.numpy as jnp
from jax import lax
from jax.experimental import pallas as pl
from jax.experimental.pallas import tpu as pltpu


def _vmem():
    return pl.BlockSpec(memory_space=pltpu.MemorySpace.VMEM)


def make_gnn_forward_kernel(max_iterations, convergence_threshold):
    # Plain Python float so it is inlined as a literal in the kernel jaxpr
    # (a jnp scalar here becomes a captured constant -> tracing error).
    thr2 = float(convergence_threshold) ** 2

    def kernel(states0_ref, gather_ref, const_feat_ref,
               w1a_ref, w1b_ref, b1_ref, w2_ref, b2_ref, agg_ref,
               ow1_ref, ob1_ref, ow2_ref, ob2_ref,
               out_ref, niter_ref):
        """Fused GNN forward.

        states0_ref    : (N, S)   initial node states
        gather_ref     : (E, N)   one-hot gather of edge-target nodes
        const_feat_ref : (E, 2L)  [label[src], label[tgt]] (iteration-invariant)
        w1a_ref        : (2L, H)  first-layer weights acting on the label part
        w1b_ref        : (S,  H)  first-layer weights acting on the gathered state
        agg_ref        : (N, E)   aggregation matrix
        ow*/ob*        : output-MLP params (ow2/ob2 zero-padded to 128 lanes)
        out_ref        : (N, 128) lane-dense padded output
        niter_ref      : (1, 1) int32 -> number of transition iterations run
        """
        E = gather_ref.shape[0]
        S = states0_ref.shape[1]

        # ---- iteration-invariant hoists ----
        # concat([lbl_src, lbl_tgt, state_tgt]) @ W1 + b1
        #   == (const_feat @ W1a + b1)  +  state_tgt @ W1b
        const_hidden = (
            jnp.dot(const_feat_ref[...], w1a_ref[...],
                    preferred_element_type=jnp.float32)
            + b1_ref[...])                                        # (E, H)
        # Hoist the (1,S)->(E,S) bias broadcast out of the unrolled loop.
        b2_bcast = jnp.broadcast_to(b2_ref[...], (E, S))          # (E, S)

        gather = gather_ref[...]          # (E, N)
        agg = agg_ref[...]                # (N, E)
        w1b = w1b_ref[...]                # (S, H)
        w2 = w2_ref[...]                  # (H, S)

        # ---- fixed-point iteration ----
        # Convergence bookkeeping stays in vregs ((1,1) carries): no per-iter
        # XLU->scalar extract, SMEM round-trip or scalar branch on the critical
        # path; everything is gated with vector selects.
        states0 = states0_ref[...]                                # (N, S)
        done0 = jnp.zeros((1, 1), jnp.bool_)
        niter0 = jnp.zeros((1, 1), jnp.int32)

        def body(_, carry):
            states, done, niter = carry
            # gather target-node state per edge: (E,N) @ (N,S) -> (E,S)
            tgt_state = jnp.dot(gather, states,
                                preferred_element_type=jnp.float32)
            h = jnp.tanh(
                jnp.dot(tgt_state, w1b, preferred_element_type=jnp.float32)
                + const_hidden)                                   # (E, H)
            edge_states = jnp.tanh(
                jnp.dot(h, w2, preferred_element_type=jnp.float32)
                + b2_bcast)                                       # (E, S)
            new_states = jnp.dot(agg, edge_states,
                                 preferred_element_type=jnp.float32)  # (N, S)
            diff = new_states - states
            # all(||new-old||_2 < thr)  <=>  max_n(sum_s diff^2) < thr^2 (no sqrt)
            max_dist2 = jnp.max(jnp.sum(diff * diff, axis=1, keepdims=True),
                                axis=0, keepdims=True)            # (1, 1)
            # Reference semantics: the iteration that converges still commits
            # its new_state and is counted; afterwards nothing changes.
            states = jnp.where(done, states, new_states)
            niter = niter + jnp.where(done, 0, 1)
            done = jnp.logical_or(done, max_dist2 < thr2)
            return (states, done, niter)

        states, done, niter = lax.fori_loop(
            0, max_iterations, body, (states0, done0, niter0), unroll=True)

        # ---- fused output MLP (graph_based = False path) ----
        # TODO(synk): graph_based=True would insert graph_agg @ states here.
        hid = jax.nn.sigmoid(
            jnp.dot(states, ow1_ref[...], preferred_element_type=jnp.float32)
            + ob1_ref[...])
        out_ref[...] = (jnp.dot(hid, ow2_ref[...],
                                preferred_element_type=jnp.float32)
                        + ob2_ref[...])
        niter_ref[...] = niter

    return kernel


def make_gnn_call(N, out_pad, max_iterations, convergence_threshold):
    kernel = make_gnn_forward_kernel(max_iterations, convergence_threshold)
    return pl.pallas_call(
        kernel,
        out_shape=(jax.ShapeDtypeStruct((N, out_pad), jnp.float32),  # padded output
                   jax.ShapeDtypeStruct((1, 1), jnp.int32)),         # n_iterations
        in_specs=[_vmem()] * 13,
        out_specs=(_vmem(), _vmem()),
        # Safe on all chips (== v6e/v7x scoped default, > v5e's 16 MiB default).
        # Raise when scaling N·E (dense gather/agg are the O(N·E) VMEM terms).
        compiler_params=pltpu.CompilerParams(
            vmem_limit_bytes=32 * 1024 * 1024),
    )


if __name__ == "__main__":
    # --- config (mirrors GNN.__init__) ---
    N = 16                    # n_nodes
    E = 32                    # number of edges
    state_dim = 8
    label_dim = 4
    st_hidden = 32            # state_transition_hidden_dims = [32]
    out_hidden = 32           # output_function_hidden_dims  = [32]
    output_dim = 3
    max_iterations = 5
    convergence_threshold = 1e-6
    OUT_PAD = 128             # lane-dense output slab; sliced back to output_dim

    key = jax.random.PRNGKey(0)
    k = jax.random.split(key, 10)

    # --- inputs ---
    edges = jax.random.randint(k[0], (E, 2), 0, N)                       # (E, 2)
    node_labels = jax.random.normal(k[1], (N, label_dim), jnp.float32)   # (N, L)
    # aggregation: sum edge messages into each edge's source node
    agg_matrix = jax.nn.one_hot(edges[:, 0], N, dtype=jnp.float32).T     # (N, E)

    # --- deterministic parameters (shapes from StateTransition / MLP) ---
    d_in = state_dim + 2 * label_dim
    st_w1 = 0.2 * jax.random.normal(k[2], (d_in, st_hidden), jnp.float32)
    st_w1a = st_w1[: 2 * label_dim]          # acts on [label[src], label[tgt]]
    st_w1b = st_w1[2 * label_dim:]           # acts on state[tgt]
    st_b1 = 0.1 * jax.random.normal(k[3], (1, st_hidden), jnp.float32)
    st_w2 = 0.2 * jax.random.normal(k[4], (st_hidden, state_dim), jnp.float32)
    st_b2 = 0.1 * jax.random.normal(k[5], (1, state_dim), jnp.float32)

    out_w1 = 0.2 * jax.random.normal(k[6], (state_dim, out_hidden), jnp.float32)
    out_b1 = 0.1 * jax.random.normal(k[7], (1, out_hidden), jnp.float32)
    out_w2 = 0.2 * jax.random.normal(k[8], (out_hidden, output_dim), jnp.float32)
    out_b2 = 0.1 * jax.random.normal(k[9], (1, output_dim), jnp.float32)

    # zero-pad the output projection to a lane-dense (.., 128) slab (unmasked vst)
    out_w2_p = jnp.zeros((out_hidden, OUT_PAD), jnp.float32).at[:, :output_dim].set(out_w2)
    out_b2_p = jnp.zeros((1, OUT_PAD), jnp.float32).at[:, :output_dim].set(out_b2)

    # iteration-constant edge features and the target-node gather matrix
    const_feat = jnp.concatenate(
        [node_labels[edges[:, 0]], node_labels[edges[:, 1]]], axis=-1)   # (E, 2L)
    gather_tgt = jax.nn.one_hot(edges[:, 1], N, dtype=jnp.float32)       # (E, N)

    gnn_call = make_gnn_call(N, OUT_PAD, max_iterations, convergence_threshold)

    @jax.jit
    def gnn_forward(node_states0):
        out_padded, n_iter = gnn_call(
            node_states0, gather_tgt, const_feat,
            st_w1a, st_w1b, st_b1, st_w2, st_b2, agg_matrix,
            out_w1, out_b1, out_w2_p, out_b2_p)
        return out_padded[:, :output_dim], n_iter[0, 0]

    node_states0 = jnp.zeros((N, state_dim), jnp.float32)      # self.node_state
    output, n_iterations = gnn_forward(node_states0)
    jax.block_until_ready(output)

    # --- pure-JAX reference (same math, host-side early exit) ---
    def gnn_ref(states0):
        states = states0
        n_it = 0
        for _ in range(max_iterations):
            tgt_state = gather_tgt @ states
            h = jnp.tanh(const_feat @ st_w1a + tgt_state @ st_w1b + st_b1)
            es = jnp.tanh(h @ st_w2 + st_b2)
            new_states = agg_matrix @ es
            d2 = jnp.sum((new_states - states) ** 2, axis=1)
            converged = bool(jnp.max(d2) < convergence_threshold ** 2)
            states = new_states
            n_it += 1
            if converged:
                break
        hid = jax.nn.sigmoid(states @ out_w1 + out_b1)
        return hid @ out_w2 + out_b2, n_it

    ref_out, ref_iters = gnn_ref(node_states0)

    assert output.shape == (N, output_dim)
    assert int(n_iterations) == ref_iters
    assert bool(jnp.allclose(output, ref_out, atol=1e-4, rtol=1e-4))
    print("KERNEL_OK")
</pallas_src>

<mosaic_0001>
module attributes {stable_mosaic.version = 11 : i64} {
  func.func @kernel(%arg0: memref<16x8xf32, #tpu.memory_space<vmem>>, %arg1: memref<32x16xf32, #tpu.memory_space<vmem>>, %arg2: memref<32x8xf32, #tpu.memory_space<vmem>>, %arg3: memref<8x32xf32, #tpu.memory_space<vmem>>, %arg4: memref<8x32xf32, #tpu.memory_space<vmem>>, %arg5: memref<1x32xf32, #tpu.memory_space<vmem>>, %arg6: memref<32x8xf32, #tpu.memory_space<vmem>>, %arg7: memref<1x8xf32, #tpu.memory_space<vmem>>, %arg8: memref<16x32xf32, #tpu.memory_space<vmem>>, %arg9: memref<8x32xf32, #tpu.memory_space<vmem>>, %arg10: memref<1x32xf32, #tpu.memory_space<vmem>>, %arg11: memref<32x128xf32, #tpu.memory_space<vmem>>, %arg12: memref<1x128xf32, #tpu.memory_space<vmem>>, %arg13: memref<16x128xf32, #tpu.memory_space<vmem>>, %arg14: memref<1x1xi32, #tpu.memory_space<vmem>>) attributes {dimension_semantics = [], scalar_prefetch = 0 : i64, scratch_operands = 0 : i64, tpu.core_type = #tpu.core_type<tc>} {
    %c0 = arith.constant 0 : index
    %c0_0 = arith.constant 0 : index
    %0 = vector.load %arg2[%c0, %c0_0] : memref<32x8xf32, #tpu.memory_space<vmem>>, vector<32x8xf32>
    %c0_1 = arith.constant 0 : index
    %c0_2 = arith.constant 0 : index
    %1 = vector.load %arg3[%c0_1, %c0_2] : memref<8x32xf32, #tpu.memory_space<vmem>>, vector<8x32xf32>
    %cst = arith.constant dense<0.000000e+00> : vector<32x32xf32>
    %2 = tpu.matmul %0, %1, %cst {dimension_numbers = #tpu.dot_dimension_numbers<[1], [0], [0], [1], [0, 0, 1, 1], [], []>} : vector<32x8xf32>, vector<8x32xf32>, vector<32x32xf32> -> vector<32x32xf32>
    %c0_3 = arith.constant 0 : index
    %c0_4 = arith.constant 0 : index
    %3 = vector.load %arg5[%c0_3, %c0_4] : memref<1x32xf32, #tpu.memory_space<vmem>>, vector<1x32xf32>
    %4 = vector.broadcast %3 : vector<1x32xf32> to vector<32x32xf32>
    %5 = arith.addf %2, %4 : vector<32x32xf32>
    %c0_5 = arith.constant 0 : index
    %c0_6 = arith.constant 0 : index
    %6 = vector.load %arg7[%c0_5, %c0_6] : memref<1x8xf32, #tpu.memory_space<vmem>>, vector<1x8xf32>
    %7 = vector.shape_cast %6 : vector<1x8xf32> to vector<1x8xf32>
    %8 = vector.broadcast %7 : vector<1x8xf32> to vector<32x8xf32>
    %c0_7 = arith.constant 0 : index
    %c0_8 = arith.constant 0 : index
    %9 = vector.load %arg1[%c0_7, %c0_8] : memref<32x16xf32, #tpu.memory_space<vmem>>, vector<32x16xf32>
    %c0_9 = arith.constant 0 : index
    %c0_10 = arith.constant 0 : index
    %10 = vector.load %arg8[%c0_9, %c0_10] : memref<16x32xf32, #tpu.memory_space<vmem>>, vector<16x32xf32>
    %c0_11 = arith.constant 0 : index
    %c0_12 = arith.constant 0 : index
    %11 = vector.load %arg4[%c0_11, %c0_12] : memref<8x32xf32, #tpu.memory_space<vmem>>, vector<8x32xf32>
    %c0_13 = arith.constant 0 : index
    %c0_14 = arith.constant 0 : index
    %12 = vector.load %arg6[%c0_13, %c0_14] : memref<32x8xf32, #tpu.memory_space<vmem>>, vector<32x8xf32>
    %c0_15 = arith.constant 0 : index
    %c0_16 = arith.constant 0 : index
    %13 = vector.load %arg0[%c0_15, %c0_16] : memref<16x8xf32, #tpu.memory_space<vmem>>, vector<16x8xf32>
    %false = arith.constant false
    %14 = vector.broadcast %false : i1 to vector<1x1xi1>
    %c0_i32 = arith.constant 0 : i32
    %15 = vector.broadcast %c0_i32 : i32 to vector<1x1xi32>
    %c0_i32_17 = arith.constant 0 : i32
    %cst_18 = arith.constant dense<0.000000e+00> : vector<32x8xf32>
    %16 = tpu.matmul %9, %13, %cst_18 {dimension_numbers = #tpu.dot_dimension_numbers<[1], [0], [0], [1], [0, 0, 1, 1], [], []>} : vector<32x16xf32>, vector<16x8xf32>, vector<32x8xf32> -> vector<32x8xf32>
    %cst_19 = arith.constant dense<0.000000e+00> : vector<32x32xf32>
    %17 = tpu.matmul %16, %11, %cst_19 {dimension_numbers = #tpu.dot_dimension_numbers<[1], [0], [0], [1], [0, 0, 1, 1], [], []>} : vector<32x8xf32>, vector<8x32xf32>, vector<32x32xf32> -> vector<32x32xf32>
    %18 = arith.addf %17, %5 : vector<32x32xf32>
    %19 = math.tanh %18 : vector<32x32xf32>
    %cst_20 = arith.constant dense<0.000000e+00> : vector<32x8xf32>
    %20 = tpu.matmul %19, %12, %cst_20 {dimension_numbers = #tpu.dot_dimension_numbers<[1], [0], [0], [1], [0, 0, 1, 1], [], []>} : vector<32x32xf32>, vector<32x8xf32>, vector<32x8xf32> -> vector<32x8xf32>
    %21 = arith.addf %20, %8 : vector<32x8xf32>
    %22 = math.tanh %21 : vector<32x8xf32>
    %cst_21 = arith.constant dense<0.000000e+00> : vector<16x8xf32>
    %23 = tpu.matmul %10, %22, %cst_21 {dimension_numbers = #tpu.dot_dimension_numbers<[1], [0], [0], [1], [0, 0, 1, 1], [], []>} : vector<16x32xf32>, vector<32x8xf32>, vector<16x8xf32> -> vector<16x8xf32>
    %24 = arith.subf %23, %13 : vector<16x8xf32>
    %25 = arith.mulf %24, %24 : vector<16x8xf32>
    %cst_22 = arith.constant dense<0.000000e+00> : vector<16xf32>
    %26 = vector.multi_reduction <add>, %25, %cst_22 [1] : vector<16x8xf32> to vector<16xf32>
    %27 = vector.shape_cast %26 : vector<16xf32> to vector<16x1xf32>
    %cst_23 = arith.constant dense<0xFF800000> : vector<1xf32>
    %28 = vector.multi_reduction <maximumf>, %27, %cst_23 [0] : vector<16x1xf32> to vector<1xf32>
    %29 = vector.shape_cast %28 : vector<1xf32> to vector<1x1xf32>
    %30 = vector.shape_cast %14 : vector<1x1xi1> to vector<1x1xi1>
    %31 = vector.broadcast %30 : vector<1x1xi1> to vector<16x8xi1>
    %32 = arith.select %31, %13, %23 : vector<16x8xi1>, vector<16x8xf32>
    %c0_i32_24 = arith.constant 0 : i32
    %c1_i32 = arith.constant 1 : i32
    %33 = vector.broadcast %c0_i32_24 : i32 to vector<1x1xi32>
    %34 = vector.broadcast %c1_i32 : i32 to vector<1x1xi32>
    %35 = arith.select %14, %33, %34 : vector<1x1xi1>, vector<1x1xi32>
    %36 = arith.addi %15, %35 : vector<1x1xi32>
    %cst_25 = arith.constant 9.99999996E-13 : f32
    %37 = vector.broadcast %cst_25 : f32 to vector<1x1xf32>
    %38 = arith.cmpf olt, %29, %37 : vector<1x1xf32>
    %39 = arith.ori %14, %38 : vector<1x1xi1>
    %c1_i32_26 = arith.constant 1 : i32
    %cst_27 = arith.constant dense<0.000000e+00> : vector<32x8xf32>
    %40 = tpu.matmul %9, %32, %cst_27 {dimension_numbers = #tpu.dot_dimension_numbers<[1], [0], [0], [1], [0, 0, 1, 1], [], []>} : vector<32x16xf32>, vector<16x8xf32>, vector<32x8xf32> -> vector<32x8xf32>
    %cst_28 = arith.constant dense<0.000000e+00> : vector<32x32xf32>
    %41 = tpu.matmul %40, %11, %cst_28 {dimension_numbers = #tpu.dot_dimension_numbers<[1], [0], [0], [1], [0, 0, 1, 1], [], []>} : vector<32x8xf32>, vector<8x32xf32>, vector<32x32xf32> -> vector<32x32xf32>
    %42 = arith.addf %41, %5 : vector<32x32xf32>
    %43 = math.tanh %42 : vector<32x32xf32>
    %cst_29 = arith.constant dense<0.000000e+00> : vector<32x8xf32>
    %44 = tpu.matmul %43, %12, %cst_29 {dimension_numbers = #tpu.dot_dimension_numbers<[1], [0], [0], [1], [0, 0, 1, 1], [], []>} : vector<32x32xf32>, vector<32x8xf32>, vector<32x8xf32> -> vector<32x8xf32>
    %45 = arith.addf %44, %8 : vector<32x8xf32>
    %46 = math.tanh %45 : vector<32x8xf32>
    %cst_30 = arith.constant dense<0.000000e+00> : vector<16x8xf32>
    %47 = tpu.matmul %10, %46, %cst_30 {dimension_numbers = #tpu.dot_dimension_numbers<[1], [0], [0], [1], [0, 0, 1, 1], [], []>} : vector<16x32xf32>, vector<32x8xf32>, vector<16x8xf32> -> vector<16x8xf32>
    %48 = arith.subf %47, %32 : vector<16x8xf32>
    %49 = arith.mulf %48, %48 : vector<16x8xf32>
    %cst_31 = arith.constant dense<0.000000e+00> : vector<16xf32>
    %50 = vector.multi_reduction <add>, %49, %cst_31 [1] : vector<16x8xf32> to vector<16xf32>
    %51 = vector.shape_cast %50 : vector<16xf32> to vector<16x1xf32>
    %cst_32 = arith.constant dense<0xFF800000> : vector<1xf32>
    %52 = vector.multi_reduction <maximumf>, %51, %cst_32 [0] : vector<16x1xf32> to vector<1xf32>
    %53 = vector.shape_cast %52 : vector<1xf32> to vector<1x1xf32>
    %54 = vector.shape_cast %39 : vector<1x1xi1> to vector<1x1xi1>
    %55 = vector.broadcast %54 : vector<1x1xi1> to vector<16x8xi1>
    %56 = arith.select %55, %32, %47 : vector<16x8xi1>, vector<16x8xf32>
    %c0_i32_33 = arith.constant 0 : i32
    %c1_i32_34 = arith.constant 1 : i32
    %57 = vector.broadcast %c0_i32_33 : i32 to vector<1x1xi32>
    %58 = vector.broadcast %c1_i32_34 : i32 to vector<1x1xi32>
    %59 = arith.select %39, %57, %58 : vector<1x1xi1>, vector<1x1xi32>
    %60 = arith.addi %36, %59 : vector<1x1xi32>
    %cst_35 = arith.constant 9.99999996E-13 : f32
    %61 = vector.broadcast %cst_35 : f32 to vector<1x1xf32>
    %62 = arith.cmpf olt, %53, %61 : vector<1x1xf32>
    %63 = arith.ori %39, %62 : vector<1x1xi1>
    %c2_i32 = arith.constant 2 : i32
    %cst_36 = arith.constant dense<0.000000e+00> : vector<32x8xf32>
    %64 = tpu.matmul %9, %56, %cst_36 {dimension_numbers = #tpu.dot_dimension_numbers<[1], [0], [0], [1], [0, 0, 1, 1], [], []>} : vector<32x16xf32>, vector<16x8xf32>, vector<32x8xf32> -> vector<32x8xf32>
    %cst_37 = arith.constant dense<0.000000e+00> : vector<32x32xf32>
    %65 = tpu.matmul %64, %11, %cst_37 {dimension_numbers = #tpu.dot_dimension_numbers<[1], [0], [0], [1], [0, 0, 1, 1], [], []>} : vector<32x8xf32>, vector<8x32xf32>, vector<32x32xf32> -> vector<32x32xf32>
    %66 = arith.addf %65, %5 : vector<32x32xf32>
    %67 = math.tanh %66 : vector<32x32xf32>
    %cst_38 = arith.constant dense<0.000000e+00> : vector<32x8xf32>
    %68 = tpu.matmul %67, %12, %cst_38 {dimension_numbers = #tpu.dot_dimension_numbers<[1], [0], [0], [1], [0, 0, 1, 1], [], []>} : vector<32x32xf32>, vector<32x8xf32>, vector<32x8xf32> -> vector<32x8xf32>
    %69 = arith.addf %68, %8 : vector<32x8xf32>
    %70 = math.tanh %69 : vector<32x8xf32>
    %cst_39 = arith.constant dense<0.000000e+00> : vector<16x8xf32>
    %71 = tpu.matmul %10, %70, %cst_39 {dimension_numbers = #tpu.dot_dimension_numbers<[1], [0], [0], [1], [0, 0, 1, 1], [], []>} : vector<16x32xf32>, vector<32x8xf32>, vector<16x8xf32> -> vector<16x8xf32>
    %72 = arith.subf %71, %56 : vector<16x8xf32>
    %73 = arith.mulf %72, %72 : vector<16x8xf32>
    %cst_40 = arith.constant dense<0.000000e+00> : vector<16xf32>
    %74 = vector.multi_reduction <add>, %73, %cst_40 [1] : vector<16x8xf32> to vector<16xf32>
    %75 = vector.shape_cast %74 : vector<16xf32> to vector<16x1xf32>
    %cst_41 = arith.constant dense<0xFF800000> : vector<1xf32>
    %76 = vector.multi_reduction <maximumf>, %75, %cst_41 [0] : vector<16x1xf32> to vector<1xf32>
    %77 = vector.shape_cast %76 : vector<1xf32> to vector<1x1xf32>
    %78 = vector.shape_cast %63 : vector<1x1xi1> to vector<1x1xi1>
    %79 = vector.broadcast %78 : vector<1x1xi1> to vector<16x8xi1>
    %80 = arith.select %79, %56, %71 : vector<16x8xi1>, vector<16x8xf32>
    %c0_i32_42 = arith.constant 0 : i32
    %c1_i32_43 = arith.constant 1 : i32
    %81 = vector.broadcast %c0_i32_42 : i32 to vector<1x1xi32>
    %82 = vector.broadcast %c1_i32_43 : i32 to vector<1x1xi32>
    %83 = arith.select %63, %81, %82 : vector<1x1xi1>, vector<1x1xi32>
    %84 = arith.addi %60, %83 : vector<1x1xi32>
    %cst_44 = arith.constant 9.99999996E-13 : f32
    %85 = vector.broadcast %cst_44 : f32 to vector<1x1xf32>
    %86 = arith.cmpf olt, %77, %85 : vector<1x1xf32>
    %87 = arith.ori %63, %86 : vector<1x1xi1>
    %c3_i32 = arith.constant 3 : i32
    %cst_45 = arith.constant dense<0.000000e+00> : vector<32x8xf32>
    %88 = tpu.matmul %9, %80, %cst_45 {dimension_numbers = #tpu.dot_dimension_numbers<[1], [0], [0], [1], [0, 0, 1, 1], [], []>} : vector<32x16xf32>, vector<16x8xf32>, vector<32x8xf32> -> vector<32x8xf32>
    %cst_46 = arith.constant dense<0.000000e+00> : vector<32x32xf32>
    %89 = tpu.matmul %88, %11, %cst_46 {dimension_numbers = #tpu.dot_dimension_numbers<[1], [0], [0], [1], [0, 0, 1, 1], [], []>} : vector<32x8xf32>, vector<8x32xf32>, vector<32x32xf32> -> vector<32x32xf32>
    %90 = arith.addf %89, %5 : vector<32x32xf32>
    %91 = math.tanh %90 : vector<32x32xf32>
    %cst_47 = arith.constant dense<0.000000e+00> : vector<32x8xf32>
    %92 = tpu.matmul %91, %12, %cst_47 {dimension_numbers = #tpu.dot_dimension_numbers<[1], [0], [0], [1], [0, 0, 1, 1], [], []>} : vector<32x32xf32>, vector<32x8xf32>, vector<32x8xf32> -> vector<32x8xf32>
    %93 = arith.addf %92, %8 : vector<32x8xf32>
    %94 = math.tanh %93 : vector<32x8xf32>
    %cst_48 = arith.constant dense<0.000000e+00> : vector<16x8xf32>
    %95 = tpu.matmul %10, %94, %cst_48 {dimension_numbers = #tpu.dot_dimension_numbers<[1], [0], [0], [1], [0, 0, 1, 1], [], []>} : vector<16x32xf32>, vector<32x8xf32>, vector<16x8xf32> -> vector<16x8xf32>
    %96 = arith.subf %95, %80 : vector<16x8xf32>
    %97 = arith.mulf %96, %96 : vector<16x8xf32>
    %cst_49 = arith.constant dense<0.000000e+00> : vector<16xf32>
    %98 = vector.multi_reduction <add>, %97, %cst_49 [1] : vector<16x8xf32> to vector<16xf32>
    %99 = vector.shape_cast %98 : vector<16xf32> to vector<16x1xf32>
    %cst_50 = arith.constant dense<0xFF800000> : vector<1xf32>
    %100 = vector.multi_reduction <maximumf>, %99, %cst_50 [0] : vector<16x1xf32> to vector<1xf32>
    %101 = vector.shape_cast %100 : vector<1xf32> to vector<1x1xf32>
    %102 = vector.shape_cast %87 : vector<1x1xi1> to vector<1x1xi1>
    %103 = vector.broadcast %102 : vector<1x1xi1> to vector<16x8xi1>
    %104 = arith.select %103, %80, %95 : vector<16x8xi1>, vector<16x8xf32>
    %c0_i32_51 = arith.constant 0 : i32
    %c1_i32_52 = arith.constant 1 : i32
    %105 = vector.broadcast %c0_i32_51 : i32 to vector<1x1xi32>
    %106 = vector.broadcast %c1_i32_52 : i32 to vector<1x1xi32>
    %107 = arith.select %87, %105, %106 : vector<1x1xi1>, vector<1x1xi32>
    %108 = arith.addi %84, %107 : vector<1x1xi32>
    %cst_53 = arith.constant 9.99999996E-13 : f32
    %109 = vector.broadcast %cst_53 : f32 to vector<1x1xf32>
    %110 = arith.cmpf olt, %101, %109 : vector<1x1xf32>
    %111 = arith.ori %87, %110 : vector<1x1xi1>
    %c4_i32 = arith.constant 4 : i32
    %cst_54 = arith.constant dense<0.000000e+00> : vector<32x8xf32>
    %112 = tpu.matmul %9, %104, %cst_54 {dimension_numbers = #tpu.dot_dimension_numbers<[1], [0], [0], [1], [0, 0, 1, 1], [], []>} : vector<32x16xf32>, vector<16x8xf32>, vector<32x8xf32> -> vector<32x8xf32>
    %cst_55 = arith.constant dense<0.000000e+00> : vector<32x32xf32>
    %113 = tpu.matmul %112, %11, %cst_55 {dimension_numbers = #tpu.dot_dimension_numbers<[1], [0], [0], [1], [0, 0, 1, 1], [], []>} : vector<32x8xf32>, vector<8x32xf32>, vector<32x32xf32> -> vector<32x32xf32>
    %114 = arith.addf %113, %5 : vector<32x32xf32>
    %115 = math.tanh %114 : vector<32x32xf32>
    %cst_56 = arith.constant dense<0.000000e+00> : vector<32x8xf32>
    %116 = tpu.matmul %115, %12, %cst_56 {dimension_numbers = #tpu.dot_dimension_numbers<[1], [0], [0], [1], [0, 0, 1, 1], [], []>} : vector<32x32xf32>, vector<32x8xf32>, vector<32x8xf32> -> vector<32x8xf32>
    %117 = arith.addf %116, %8 : vector<32x8xf32>
    %118 = math.tanh %117 : vector<32x8xf32>
    %cst_57 = arith.constant dense<0.000000e+00> : vector<16x8xf32>
    %119 = tpu.matmul %10, %118, %cst_57 {dimension_numbers = #tpu.dot_dimension_numbers<[1], [0], [0], [1], [0, 0, 1, 1], [], []>} : vector<16x32xf32>, vector<32x8xf32>, vector<16x8xf32> -> vector<16x8xf32>
    %120 = arith.subf %119, %104 : vector<16x8xf32>
    %121 = arith.mulf %120, %120 : vector<16x8xf32>
    %cst_58 = arith.constant dense<0.000000e+00> : vector<16xf32>
    %122 = vector.multi_reduction <add>, %121, %cst_58 [1] : vector<16x8xf32> to vector<16xf32>
    %123 = vector.shape_cast %122 : vector<16xf32> to vector<16x1xf32>
    %cst_59 = arith.constant dense<0xFF800000> : vector<1xf32>
    %124 = vector.multi_reduction <maximumf>, %123, %cst_59 [0] : vector<16x1xf32> to vector<1xf32>
    %125 = vector.shape_cast %124 : vector<1xf32> to vector<1x1xf32>
    %126 = vector.shape_cast %111 : vector<1x1xi1> to vector<1x1xi1>
    %127 = vector.broadcast %126 : vector<1x1xi1> to vector<16x8xi1>
    %128 = arith.select %127, %104, %119 : vector<16x8xi1>, vector<16x8xf32>
    %c0_i32_60 = arith.constant 0 : i32
    %c1_i32_61 = arith.constant 1 : i32
    %129 = vector.broadcast %c0_i32_60 : i32 to vector<1x1xi32>
    %130 = vector.broadcast %c1_i32_61 : i32 to vector<1x1xi32>
    %131 = arith.select %111, %129, %130 : vector<1x1xi1>, vector<1x1xi32>
    %132 = arith.addi %108, %131 : vector<1x1xi32>
    %cst_62 = arith.constant 9.99999996E-13 : f32
    %133 = vector.broadcast %cst_62 : f32 to vector<1x1xf32>
    %134 = arith.cmpf olt, %125, %133 : vector<1x1xf32>
    %135 = arith.ori %111, %134 : vector<1x1xi1>
    %c0_63 = arith.constant 0 : index
    %c0_64 = arith.constant 0 : index
    %136 = vector.load %arg9[%c0_63, %c0_64] : memref<8x32xf32, #tpu.memory_space<vmem>>, vector<8x32xf32>
    %cst_65 = arith.constant dense<0.000000e+00> : vector<16x32xf32>
    %137 = tpu.matmul %128, %136, %cst_65 {dimension_numbers = #tpu.dot_dimension_numbers<[1], [0], [0], [1], [0, 0, 1, 1], [], []>} : vector<16x8xf32>, vector<8x32xf32>, vector<16x32xf32> -> vector<16x32xf32>
    %c0_66 = arith.constant 0 : index
    %c0_67 = arith.constant 0 : index
    %138 = vector.load %arg10[%c0_66, %c0_67] : memref<1x32xf32, #tpu.memory_space<vmem>>, vector<1x32xf32>
    %139 = vector.broadcast %138 : vector<1x32xf32> to vector<16x32xf32>
    %140 = arith.addf %137, %139 : vector<16x32xf32>
    %141 = arith.negf %140 : vector<16x32xf32>
    %142 = math.exp %141 : vector<16x32xf32>
    %cst_68 = arith.constant 1.000000e+00 : f32
    %143 = vector.broadcast %cst_68 : f32 to vector<16x32xf32>
    %144 = arith.addf %143, %142 : vector<16x32xf32>
    %145 = arith.divf %143, %144 : vector<16x32xf32>
    %c0_69 = arith.constant 0 : index
    %c0_70 = arith.constant 0 : index
    %146 = vector.load %arg11[%c0_69, %c0_70] : memref<32x128xf32, #tpu.memory_space<vmem>>, vector<32x128xf32>
    %cst_71 = arith.constant dense<0.000000e+00> : vector<16x128xf32>
    %147 = tpu.matmul %145, %146, %cst_71 {dimension_numbers = #tpu.dot_dimension_numbers<[1], [0], [0], [1], [0, 0, 1, 1], [], []>} : vector<16x32xf32>, vector<32x128xf32>, vector<16x128xf32> -> vector<16x128xf32>
    %c0_72 = arith.constant 0 : index
    %c0_73 = arith.constant 0 : index
    %148 = vector.load %arg12[%c0_72, %c0_73] : memref<1x128xf32, #tpu.memory_space<vmem>>, vector<1x128xf32>
    %149 = vector.broadcast %148 : vector<1x128xf32> to vector<16x128xf32>
    %150 = arith.addf %147, %149 : vector<16x128xf32>
    %c0_74 = arith.constant 0 : index
    %c0_75 = arith.constant 0 : index
    %151 = vector.load %arg13[%c0_74, %c0_75] : memref<16x128xf32, #tpu.memory_space<vmem>>, vector<16x128xf32>
    tpu.vector_store %arg13[%c0_74, %c0_75], %150 {strides = array<i32>} : memref<16x128xf32, #tpu.memory_space<vmem>>, vector<16x128xf32>,
    %c0_76 = arith.constant 0 : index
    %c0_77 = arith.constant 0 : index
    %152 = vector.load %arg14[%c0_76, %c0_77] : memref<1x1xi32, #tpu.memory_space<vmem>>, vector<1x1xi32>
    tpu.vector_store %arg14[%c0_76, %c0_77], %132 {strides = array<i32>} : memref<1x1xi32, #tpu.memory_space<vmem>>, vector<1x1xi32>,
    return
  }
}

</mosaic_0001>

<bundles_post_ra>
// kernel: gnn_forward.1
= control target key start
LH: loop header
LB: loop body
LE: loop exit
PB: predicated region body
PF: predicated region fallthrough
CT: control target
= control target key end

     0   :  { %20 = vsyncpa [#allocation3], 0  ;;  %s3909_s0 = inlined_call_operand.vmem [shape: f32[16,8], index: 0, kind: input, shape index: {}]   ;;  %s3910_s1 = inlined_call_operand.hbm [shape: f32[32,16], index: 1, kind: input, shape index: {}]   ;;  %s3911_s2 = inlined_call_operand.hbm [shape: f32[32,8], index: 2, kind: input, shape index: {}]   ;;  %s3912_s3 = inlined_call_operand.hbm [shape: f32[8,32], index: 3, kind: input, shape index: {}]   ;;  %s3913_s4 = inlined_call_operand.hbm [shape: f32[8,32], index: 4, kind: input, shape index: {}]   ;;  %s3914_s5 = inlined_call_operand.hbm [shape: f32[1,32], index: 5, kind: input, shape index: {}]   ;;  %s3915_s6 = inlined_call_operand.vmem [shape: f32[32,8], index: 6, kind: input, shape index: {}]   ;;  %s3916_s7 = inlined_call_operand.hbm [shape: f32[1,8], index: 7, kind: input, shape index: {}]   ;;  %s3917_s8 = inlined_call_operand.hbm [shape: f32[16,32], index: 8, kind: input, shape index: {}]   ;;  %s3918_s9 = inlined_call_operand.hbm [shape: f32[8,32], index: 9, kind: input, shape index: {}]   ;;  %s3919_s10 = inlined_call_operand.hbm [shape: f32[1,32], index: 10, kind: input, shape index: {}]   ;;  %s3920_s11 = inlined_call_operand.vmem [shape: f32[32,128], index: 11, kind: input, shape index: {}]   ;;  %s3921_s12 = inlined_call_operand.vmem [shape: f32[1,128], index: 12, kind: input, shape index: {}]   ;;  %s3922_s13 = inlined_call_operand.vmem [shape: f32[16,128], index: 13, kind: output, shape index: {0}]   ;;  %s3923_s14 = inlined_call_operand.hbm [shape: s32[1,1], index: 14, kind: output, shape index: {1}]  }
   0x1   :  { %21 = vsyncpa [#allocation6], 0 }
   0x2   :  { %22 = vsyncpa [#allocation9], 0 }
   0x3   :  { %23 = vsyncpa [#allocation12], 0 }
   0x4   :  { %24 = vsyncpa [#allocation15], 0 }
   0x5   :  { %25 = vsyncpa [#allocation4], 0  ;;  %s3339_s29 = smov [#allocation5]   ;;  %s3340_s15 = smov [#allocation8]  }
   0x6   :  { %s45_s30 = sshll.u32 %s3339_s29, 4  ;;  %s68_s16 = sshll.u32 %s3340_s15, 4  ;;  %s46_s30 = int_to_ptr.vmem [resolvable:$true] %s45_s30  ;;  %s69_s16 = int_to_ptr.vmem [resolvable:$true] %s68_s16 }
   0x7   :  { %s3107_s19 = scalar_lea.hbm %s3911_s2, 512 }
   0x8   :  { %p3108_p0 = scmp.ne.s32.totalorder %s3911_s2, %s3107_s19  ;;  %p3111_p1 = scmp.lt.u32.totalorder %s3107_s19, %s3911_s2 }
   0xa   :  { %p3113_p2 = pnand %p3111_p1, %p3108_p0 }
   0xc   :  { %3116 = shalt.err (!%p3113_p2)
}
   0xd   :  { %s3117_s24 = scalar_lea.vmem %s46_s30, 512  ;;  %p3122_p4 = scmp.lt.s32.totalorder %s46_s30, %s46_s30 }
   0xe   :  { %p3118_p3 = scmp.ne.s32.totalorder %s46_s30, %s3117_s24  ;;  %p3123_p5 = scmp.lt.s32.totalorder %s3117_s24, %s3117_s24 }
  0x10   :  { %p3124_p6 = por %p3123_p5, %p3122_p4 }
  0x12   :  { %p3125_p7 = pnand %p3124_p6, %p3118_p3 }
  0x14   :  { %3128 = shalt.err (!%p3125_p7)
}
  0x15   :  { %s3341_s25 = smov 128   ;;  %s3342_s26 = smov 8  }
  0x16   :  { %51 = dma.hbm_to_vmem [thread:$0]  %s3911_s2, 512, %s46_s30, [#allocation6], %s3341_s25, %s3341_s25, %s3342_s26  }
  0x17   :  { %s3129_s17 = scalar_lea.hbm %s3913_s4, 128 }
  0x18   :  { %p3130_p8 = scmp.ne.s32.totalorder %s3913_s4, %s3129_s17  ;;  %p3133_p9 = scmp.lt.u32.totalorder %s3129_s17, %s3913_s4 }
  0x1a   :  { %p3135_p10 = pnand %p3133_p9, %p3130_p8 }
  0x1c   :  { %3138 = shalt.err (!%p3135_p10)
}
  0x1d   :  { %s3139_s22 = scalar_lea.vmem %s69_s16, 128  ;;  %p3144_p12 = scmp.lt.s32.totalorder %s69_s16, %s69_s16 }
  0x1e   :  { %p3140_p11 = scmp.ne.s32.totalorder %s69_s16, %s3139_s22  ;;  %p3145_p13 = scmp.lt.s32.totalorder %s3139_s22, %s3139_s22 }
  0x20   :  { %p3146_p0 = por %p3145_p13, %p3144_p12 }
  0x22   :  { %p3147_p1 = pnand %p3146_p0, %p3140_p11 }
  0x24   :  { %3150 = shalt.err (!%p3147_p1)
}
  0x25   :  { %71 = dma.hbm_to_vmem [thread:$0]  %s3913_s4, 128, %s69_s16, [#allocation9]  }
  0x26   :  { %s3343_s23 = smov [#allocation11]   ;;  %s3344_s27 = smov [#allocation14]  }
  0x27   :  { %s90_s24 = sshll.u32 %s3343_s23, 4  ;;  %s112_s28 = sshll.u32 %s3344_s27, 4  ;;  %s91_s24 = int_to_ptr.vmem [resolvable:$true] %s90_s24  ;;  %s113_s28 = int_to_ptr.vmem [resolvable:$true] %s112_s28 }
  0x28   :  { %s3151_s17 = scalar_lea.hbm %s3916_s7, 16 }
  0x29   :  { %p3152_p2 = scmp.ne.s32.totalorder %s3916_s7, %s3151_s17  ;;  %p3155_p3 = scmp.lt.u32.totalorder %s3151_s17, %s3916_s7 }
  0x2b   :  { %p3157_p4 = pnand %p3155_p3, %p3152_p2 }
  0x2d   :  { %3160 = shalt.err (!%p3157_p4)
}
  0x2e   :  { %s3161_s4 = scalar_lea.vmem %s91_s24, 16  ;;  %s3165_s16 = scalar_lea.vmem %s91_s24, 32 }
  0x2f   :  { %p3162_p5 = scmp.ne.s32.totalorder %s91_s24, %s3161_s4  ;;  %p3166_p6 = scmp.lt.s32.totalorder %s91_s24, %s91_s24 }
  0x30   :  { %p3167_p7 = scmp.lt.s32.totalorder %s3165_s16, %s3161_s4 }
  0x32   :  { %p3168_p8 = por %p3167_p7, %p3166_p6 }
  0x34   :  { %p3169_p9 = pnand %p3168_p8, %p3162_p5 }
  0x36   :  { %3172 = shalt.err (!%p3169_p9)
}
  0x37   :  { %93 = dma.hbm_to_vmem [thread:$0]  %s3916_s7, 16, %s91_s24, [#allocation12]  }
  0x38   :  { %s3173_s27 = scalar_lea.hbm %s3918_s9, 128 }
  0x39   :  { %p3174_p10 = scmp.ne.s32.totalorder %s3918_s9, %s3173_s27  ;;  %p3177_p11 = scmp.lt.u32.totalorder %s3173_s27, %s3918_s9 }
  0x3b   :  { %p3179_p12 = pnand %p3177_p11, %p3174_p10 }
  0x3d   :  { %3182 = shalt.err (!%p3179_p12)
}
  0x3e   :  { %s3183_s19 = scalar_lea.vmem %s113_s28, 128  ;;  %p3188_p0 = scmp.lt.s32.totalorder %s113_s28, %s113_s28 }
  0x3f   :  { %p3184_p13 = scmp.ne.s32.totalorder %s113_s28, %s3183_s19  ;;  %p3189_p1 = scmp.lt.s32.totalorder %s3183_s19, %s3183_s19 }
  0x41   :  { %p3190_p2 = por %p3189_p1, %p3188_p0 }
  0x43   :  { %p3191_p3 = pnand %p3190_p2, %p3184_p13 }
  0x45   :  { %3194 = shalt.err (!%p3191_p3)
}
  0x46   :  { %115 = dma.hbm_to_vmem [thread:$0]  %s3918_s9, 128, %s113_s28, [#allocation15]  }
  0x47   :  { %s3345_s20 = smov [#allocation2]   ;;  %s3346_s4 = smov [#allocation7]  }
  0x48   :  { %s33_s21 = sshll.u32 %s3345_s20, 4  ;;  %s58_s16 = sshll.u32 %s3346_s4, 4  ;;  %s34_s21 = int_to_ptr.vmem [resolvable:$true] %s33_s21  ;;  %s59_s16 = int_to_ptr.vmem [resolvable:$true] %s58_s16 }
  0x49   :  { %s3195_s30 = scalar_lea.hbm %s3910_s1, 512 }
  0x4a   :  { %p3196_p4 = scmp.ne.s32.totalorder %s3910_s1, %s3195_s30  ;;  %p3199_p5 = scmp.lt.u32.totalorder %s3195_s30, %s3910_s1 }
  0x4c   :  { %p3201_p6 = pnand %p3199_p5, %p3196_p4 }
  0x4e   :  { %3204 = shalt.err (!%p3201_p6)
}
  0x4f   :  { %s3205_s9 = scalar_lea.vmem %s34_s21, 512  ;;  %p3210_p8 = scmp.lt.s32.totalorder %s34_s21, %s34_s21 }
  0x50   :  { %p3206_p7 = scmp.ne.s32.totalorder %s34_s21, %s3205_s9  ;;  %p3211_p9 = scmp.lt.s32.totalorder %s3205_s9, %s3205_s9 }
  0x52   :  { %p3212_p10 = por %p3211_p9, %p3210_p8 }
  0x54   :  { %p3213_p11 = pnand %p3212_p10, %p3206_p7 }
  0x56   :  { %3216 = shalt.err (!%p3213_p11)
}
  0x57   :  { %39 = dma.hbm_to_vmem [thread:$0]  %s3910_s1, 512, %s34_s21, [#allocation3], %s3341_s25, %s3341_s25, %s3342_s26  }
  0x58   :  { %s3217_s7 = scalar_lea.hbm %s3912_s3, 128 }
  0x59   :  { %p3218_p12 = scmp.ne.s32.totalorder %s3912_s3, %s3217_s7  ;;  %p3221_p13 = scmp.lt.u32.totalorder %s3217_s7, %s3912_s3 }
  0x5b   :  { %p3223_p0 = pnand %p3221_p13, %p3218_p12 }
  0x5d   :  { %3226 = shalt.err (!%p3223_p0)
}
  0x5e   :  { %s3227_s2 = scalar_lea.vmem %s59_s16, 128  ;;  %p3232_p2 = scmp.lt.s32.totalorder %s59_s16, %s59_s16 }
  0x5f   :  { %p3228_p1 = scmp.ne.s32.totalorder %s59_s16, %s3227_s2  ;;  %p3233_p3 = scmp.lt.s32.totalorder %s3227_s2, %s3227_s2 }
  0x61   :  { %p3234_p4 = por %p3233_p3, %p3232_p2 }
  0x63   :  { %p3235_p5 = pnand %p3234_p4, %p3228_p1 }
  0x65   :  { %3238 = shalt.err (!%p3235_p5)
}
  0x66   :  { %61 = dma.hbm_to_vmem [thread:$0]  %s3912_s3, 128, %s59_s16, [#allocation6]  }
  0x67   :  { %s3347_s30 = smov [#allocation10]   ;;  %s3348_s27 = smov [#allocation13]  }
  0x68   :  { %s78_s23 = sshll.u32 %s3347_s30, 4  ;;  %s99_s29 = sshll.u32 %s3348_s27, 4  ;;  %s79_s23 = int_to_ptr.vmem [resolvable:$true] %s78_s23  ;;  %s3505_s29 = int_to_ptr.vmem [resolvable:$true] %s99_s29 }
  0x69   :  { %s3239_s28 = scalar_lea.hbm %s3914_s5, 16 }
  0x6a   :  { %p3240_p6 = scmp.ne.s32.totalorder %s3914_s5, %s3239_s28  ;;  %p3243_p7 = scmp.lt.u32.totalorder %s3239_s28, %s3914_s5 }
  0x6c   :  { %p3245_p8 = pnand %p3243_p7, %p3240_p6 }
  0x6e   :  { %3248 = shalt.err (!%p3245_p8)
}
  0x6f   :  { %s3249_s3 = scalar_lea.vmem %s79_s23, 16  ;;  %s3253_s16 = scalar_lea.vmem %s79_s23, 32 }
  0x70   :  { %p3250_p9 = scmp.ne.s32.totalorder %s79_s23, %s3249_s3  ;;  %p3254_p10 = scmp.lt.s32.totalorder %s79_s23, %s79_s23 }
  0x71   :  { %p3255_p11 = scmp.lt.s32.totalorder %s3253_s16, %s3249_s3 }
  0x73   :  { %p3256_p12 = por %p3255_p11, %p3254_p10 }
  0x75   :  { %p3257_p13 = pnand %p3256_p12, %p3250_p9 }
  0x77   :  { %3260 = shalt.err (!%p3257_p13)
}
  0x78   :  { %81 = dma.hbm_to_vmem [thread:$0]  %s3914_s5, 16, %s79_s23, [#allocation9]  }
  0x79   :  { %s3261_s2 = scalar_lea.hbm %s3917_s8, 256 }
  0x7a   :  { %p3262_p0 = scmp.ne.s32.totalorder %s3917_s8, %s3261_s2  ;;  %p3265_p1 = scmp.lt.u32.totalorder %s3261_s2, %s3917_s8 }
  0x7c   :  { %p3267_p2 = pnand %p3265_p1, %p3262_p0 }
  0x7e   :  { %3270 = shalt.err (!%p3267_p2)
}
  0x7f   :  { %s3271_s15 = scalar_lea.vmem %s3505_s29, 256  ;;  %p3276_p4 = scmp.lt.s32.totalorder %s3505_s29, %s3505_s29 }
  0x80   :  { %p3272_p3 = scmp.ne.s32.totalorder %s3505_s29, %s3271_s15  ;;  %p3277_p5 = scmp.lt.s32.totalorder %s3271_s15, %s3271_s15 }
  0x82   :  { %p3278_p6 = por %p3277_p5, %p3276_p4 }
  0x84   :  { %p3279_p7 = pnand %p3278_p6, %p3272_p3 }
  0x86   :  { %3282 = shalt.err (!%p3279_p7)
}
  0x87   :  { %105 = dma.hbm_to_vmem [thread:$0]  %s3917_s8, 256, %s3505_s29, [#allocation12], %s3341_s25, %s3341_s25, %s3342_s26  }
  0x88   :  { %s3349_s9 = smov [#allocation16]   ;;  %s3283_s19 = scalar_lea.hbm %s3919_s10, 16 }
  0x89   :  { %s122_s28 = sshll.u32 %s3349_s9, 4  ;;  %p3284_p8 = scmp.ne.s32.totalorder %s3919_s10, %s3283_s19  ;;  %s123_s28 = int_to_ptr.vmem [resolvable:$true] %s122_s28 }
  0x8a   :  { %p3287_p9 = scmp.lt.u32.totalorder %s3283_s19, %s3919_s10 }
  0x8c   :  { %p3289_p10 = pnand %p3287_p9, %p3284_p8 }
  0x8e   :  { %3292 = shalt.err (!%p3289_p10)
}
  0x8f   :  { %s3293_s20 = scalar_lea.vmem %s123_s28, 16  ;;  %s3297_s8 = scalar_lea.vmem %s123_s28, 32 }
  0x90   :  { %p3294_p11 = scmp.ne.s32.totalorder %s123_s28, %s3293_s20  ;;  %p3298_p12 = scmp.lt.s32.totalorder %s123_s28, %s123_s28 }
  0x91   :  { %p3299_p13 = scmp.lt.s32.totalorder %s3297_s8, %s3293_s20 }
  0x93   :  { %p3300_p0 = por %p3299_p13, %p3298_p12 }
  0x95   :  { %p3301_p1 = pnand %p3300_p0, %p3294_p11 }
  0x97   :  { %3304 = shalt.err (!%p3301_p1)
}
  0x98   :  { %125 = dma.hbm_to_vmem [thread:$0]  %s3919_s10, 16, %s123_s28, [#allocation15]  }
  0x99   :  { %3327 = dma.done.wait [#allocation3], 512  }
  0x9a   :  { %3328 = vsyncadd [#allocation3], 4294966784 }
  0x9b   :  { %3329 = dma.done.wait [#allocation6], 640  }
  0x9c   :  { %3330 = vsyncadd [#allocation6], 4294966656 }
  0x9d   :  { %3331 = dma.done.wait [#allocation9], 144  }
  0x9e   :  { %3332 = vsyncadd [#allocation9], 4294967152 }
  0x9f   :  { %3333 = dma.done.wait [#allocation12], 272  }
  0xa0   :  { %3334 = vsyncadd [#allocation12], 4294967024 }
  0xa1   :  { %3335 = dma.done.wait [#allocation15], 144  }
  0xa2   :  { %3336 = vsyncadd [#allocation15], 4294967152  ;;  %vm287_vm0 = vcmask 130048   ;;  %v3554_v0 = vld [vmem:[%s3909_s0] sm:$0xff]  ;;  %v3559_v1 = vld [vmem:[%s3909_s0 + $0x8] sm:$0xff]  ;;  %vm169_vm1 = vcmask 64512  }
  0xa3   :  { %v3561_v2 = vld [vmem:[#allocation2] sm:$0xff]  ;;  %v2898_v3 = vpack.c.bf16 %v3559_v1, %v3554_v0  ;;  %v158_v6 = vld [vmem:[#allocation5 + $0x8] sm:$0xff]  ;;  %v159_v9 = vld [vmem:[#allocation5 + $0x10] sm:$0xff]  ;;  %vm486_vm2 = vcmask 261120   ;;  %vm2411_vm10 = vcmask 0  }
  0xa4   :  { %2671 = vmatprep.mubr.msk.f32.mxu1 %vm287_vm0, %v3561_v2  ;;  %v161_v4 = vld [vmem:[#allocation7] sm:$0xff]  ;;  %v3567_v7 = vld [vmem:[#allocation8] sm:$0xff]  ;;  %v3571_v10 = vld [vmem:[#allocation2 + $0x10] sm:$0xff] }
  0xa5   :  { %v157_v5 = vld [vmem:[#allocation5] sm:$0xff]  ;;  %2899 = vmatprep.subr.bf16.mxu1 %v2898_v3  ;;  %2659 = vmatprep.subr.mxu0 %v161_v4  ;;  %v3569_v8 = vld [vmem:[#allocation2 + $0x8] sm:$0xff]  ;;  %v160_v11 = vld [vmem:[#allocation5 + $0x18] sm:$0xff] }
  0xa6   :  { %2901 = vmatpush3.bf16.msra.mxu1 %v2898_v3  ;;  %2660 = vmatpush3.msra.mxu0 %v161_v4  ;;  %v3581_v12 = vld [vmem:[#allocation2 + $0x18] sm:$0xff]  ;;  %v281_v21 = vld [vmem:[%s3915_s6] sm:$0xff]  ;;  %v282_v22 = vld [vmem:[%s3915_s6 + $0x8] sm:$0xff] }
  0xa7   :  { %2661 = vmatprep.mubr.msk.f32.mxu0 %vm169_vm1, %v157_v5  ;;  %2677 = vmatprep.subr.mxu0 %v3567_v7  ;;  %v3597_v23 = vpack.c.bf16 %v282_v22, %v281_v21  ;;  %v283_v24 = vld [vmem:[%s3915_s6 + $0x10] sm:$0xff]  ;;  %v284_v25 = vld [vmem:[%s3915_s6 + $0x18] sm:$0xff] }
  0xa8   :  { %2662 = vmatmul.mubr.msk.f32.vlgmr.msra.gmra.mrb[0].mxu0 %vm169_vm1, %v158_v6  ;;  %v3607_v26 = vpack.c.bf16 %v284_v25, %v283_v24  ;;  %v2436_v27 = vld [vmem:[#allocation10] ss:$0 sm:$0xff]  ;;  %v3629_v44 = vld [vmem:[#allocation13] sm:$0xff]  ;;  %v3633_v45 = vld [vmem:[#allocation11] ss:$0 sm:$0xff] }
  0xa9   :  { %2672 = vmatmul.mubr.msk.f32.vlgmr.msra.gmra.mrb[0].mxu1 %vm287_vm0, %v3569_v8  ;;  %2664 = vmatprep.mubr.msk.f32.mxu0 %vm169_vm1, %v159_v9  ;;  %v3639_v60 = vld [vmem:[#allocation13 + $0x8] sm:$0xff] }
  0xaa   :  { %2674 = vmatprep.mubr.msk.f32.mxu1 %vm287_vm0, %v3571_v10  ;;  %2678 = vmatpush3.msra.mxu0 %v3567_v7 }
  0xab   :  { %2903 = vmatprep.subr.bf16.mxu1 %v3597_v23 }
  0xac   :  { %2665 = vmatmul.mubr.msk.f32.gmra.mrb[2].mxu0 %vm169_vm1, %v160_v11  ;;  %2905 = vmatpush3.bf16.msra.mxu1 %v3597_v23 }
  0xad   :  { %2675 = vmatmul.mubr.msk.f32.gmra.mrb[2].mxu1 %vm287_vm0, %v3581_v12  ;;  %2907 = vmatprep.subr.bf16.mxu1 %v3607_v26 }
  0xb0   :  { %2909 = vmatpush3.bf16.msra.mxu1 %v3607_v26 }
 0x17b   :  { %v2663_v13 = vpop.f32.mrb[0].mxu0 }
 0x17c   :  { %v2673_v14 = vpop.f32.mrb[0].mxu1  ;;  %v248_v15 = vpop.f32.mrb[1].mxu0  ;;  %v3611_v28 = vadd.f32 %v2663_v13, %v2436_v27 }
 0x17d   :  { %v366_v16 = vpop.f32.mrb[1].mxu1  ;;  %v3613_v29 = vadd.f32 %v2436_v27, %v248_v15 }
 0x17e   :  { %2679 = vmatprep.mubr.msk.f32.mxu0 %vm169_vm1, %v366_v16 }
 0x17f   :  { %2680 = vmatmul.mubr.msk.f32.vlgmr.msra.gmra.mrb[4].mxu0 %vm169_vm1, %v2673_v14  ;;  %v2666_v17 = vpop.f32.mrb[2].mxu0 }
 0x180   :  { %v2676_v18 = vpop.f32.mrb[2].mxu1  ;;  %v258_v19 = vpop.f32.mrb[3].mxu0  ;;  %v3617_v34 = vadd.f32 %v2666_v17, %v2436_v27 }
 0x181   :  { %v376_v20 = vpop.f32.mrb[3].mxu1  ;;  %v3619_v35 = vadd.f32 %v2436_v27, %v258_v19 }
 0x182   :  { %2682 = vmatprep.mubr.msk.f32.mxu0 %vm169_vm1, %v376_v20 }
 0x183   :  { %2683 = vmatmul.mubr.msk.f32.gmra.mrb[6].mxu0 %vm169_vm1, %v2676_v18 }
 0x184   :  { %2707 = vmatprep.mubr.msk.f32.mxu0 %vm486_vm2, %v3629_v44 }
 0x252   :  { %v2681_v30 = vpop.f32.mrb[4].mxu0 }
 0x253   :  { %v469_v31 = vadd.f32 %v2681_v30, %v3611_v28  ;;  %v463_v32 = vpop.f32.mrb[5].mxu0 }
 0x254   :  { %v464_v33 = vadd.f32 %v463_v32, %v3613_v29 }
 0x256   :  { %3019 = vtanh.f32 %v464_v33  ;;  %v2684_v36 = vpop.f32.mrb[6].mxu0 }
 0x257   :  { %3021 = vtanh.f32 %v469_v31  ;;  %v479_v37 = vadd.f32 %v2684_v36, %v3617_v34  ;;  %v473_v38 = vpop.f32.mrb[7].mxu0 }
 0x258   :  { %v474_v39 = vadd.f32 %v473_v38, %v3619_v35 }
 0x25a   :  { %3023 = vtanh.f32 %v474_v39 }
 0x25b   :  { %3025 = vtanh.f32 %v479_v37 }
 0x260   :  { %v3020_v40 = vpop.eup %3019 }
 0x261   :  { %v3022_v41 = vpop.eup %3021  ;;  %2693 = vmatprep.mubr.msk.f32.mxu1 %vm486_vm2, %v3020_v40 }
 0x262   :  { %2694 = vmatmul.mubr.msk.f32.vlgmr.msra.gmra.mrb[4].mxu1 %vm486_vm2, %v3022_v41 }
 0x264   :  { %v3024_v42 = vpop.eup %3023 }
 0x265   :  { %v3026_v43 = vpop.eup %3025  ;;  %2696 = vmatprep.mubr.msk.f32.mxu1 %vm486_vm2, %v3024_v42 }
 0x266   :  { %2697 = vmatmul.mubr.msk.f32.gmra.mrb[6].mxu1 %vm486_vm2, %v3026_v43 }
 0x267   :  { %2714 = vmatprep.mubr.msk.f32.mxu1 %vm287_vm0, %v3561_v2 }
 0x335   :  { %v2695_v46 = vpop.f32.mrb[4].mxu1 }
 0x336   :  { %v571_v47 = vadd.f32 %v2695_v46, %v3633_v45  ;;  %v565_v48 = vpop.f32.mrb[5].mxu1 }
 0x337   :  { %v566_v49 = vadd.f32 %v3633_v45, %v565_v48 }
 0x338   :  { %3027 = vtanh.f32 %v571_v47 }
 0x339   :  { %3029 = vtanh.f32 %v566_v49  ;;  %v2698_v50 = vpop.f32.mrb[6].mxu1 }
 0x33a   :  { %v581_v51 = vadd.f32 %v2698_v50, %v3633_v45  ;;  %v575_v52 = vpop.f32.mrb[7].mxu1 }
 0x33b   :  { %v576_v53 = vadd.f32 %v3633_v45, %v575_v52 }
 0x33c   :  { %3031 = vtanh.f32 %v581_v51 }
 0x33d   :  { %3033 = vtanh.f32 %v576_v53 }
 0x342   :  { %v3028_v54 = vpop.eup %3027 }
 0x343   :  { %v3030_v55 = vpop.eup %3029 }
 0x344   :  { %v2910_v56 = vpack.c.bf16 %v3028_v54, %v3030_v55 }
 0x346   :  { %v3032_v57 = vpop.eup %3031  ;;  %2911 = vmatprep.subr.bf16.mxu0 %v2910_v56 }
 0x347   :  { %v3034_v58 = vpop.eup %3033  ;;  %2913 = vmatpush3.bf16.msra.mxu0 %v2910_v56 }
 0x348   :  { %v2914_v59 = vpack.c.bf16 %v3032_v57, %v3034_v58 }
 0x34a   :  { %2915 = vmatprep.subr.bf16.mxu0 %v2914_v59 }
 0x34b   :  { %2917 = vmatpush3.bf16.msra.mxu0 %v2914_v59 }
 0x34c   :  { %2720 = vmatprep.subr.mxu0 %v3567_v7 }
 0x34e   :  { %2708 = vmatmul.mubr.msk.f32.vlgmr.msra.gmra.mrb[8].mxu0 %vm486_vm2, %v3639_v60 }
 0x34f   :  { %2721 = vmatpush3.msra.mxu0 %v3567_v7 }
 0x421   :  { %v3645_v61 = vpop.f32.mrb[8].mxu0 }
 0x422   :  { %v3647_v62 = vpop.f32.mrb[9].mxu0  ;;  %v670_v4 = vsub.f32 %v3645_v61, %v3559_v1 }
 0x423   :  { %v2918_v63 = vpack.c.bf16 %v3645_v61, %v3647_v62  ;;  %v669_v3 = vsub.f32 %v3647_v62, %v3554_v0 }
 0x424   :  { %v672_v9 = vmul.f32 %v670_v4, %v670_v4 }
 0x425   :  { %2919 = vmatprep.subr.bf16.mxu1 %v2918_v63  ;;  %v671_v5 = vmul.f32 %v669_v3, %v669_v3 }
 0x426   :  { %2921 = vmatpush3.bf16.msra.mxu1 %v2918_v63  ;;  %v676_v0 = vsel %vm169_vm1, %v672_v9, 0.0 }
 0x427   :  { %v673_v6 = vsel %vm169_vm1, %v671_v5, 0.0  ;;  %2923 = vmatprep.subr.bf16.mxu1 %v3597_v23 }
 0x428   :  { %674 = vadd.xlane.f32.xlu0 %v673_v6 }
 0x429   :  { %2715 = vmatmul.mubr.msk.f32.vlgmr.msra.gmra.mrb[8].mxu1 %vm287_vm0, %v3569_v8 }
 0x42a   :  { %2717 = vmatprep.mubr.msk.f32.mxu1 %vm287_vm0, %v3571_v10  ;;  %2925 = vmatpush3.bf16.msra.mxu1 %v3597_v23 }
 0x42b   :  { %2927 = vmatprep.subr.bf16.mxu1 %v3607_v26 }
 0x42c   :  { %677 = vadd.xlane.f32.xlu0 %v676_v0 }
 0x42d   :  { %2718 = vmatmul.mubr.msk.f32.gmra.mrb[10].mxu1 %vm287_vm0, %v3581_v12 }
 0x42e   :  { %2929 = vmatpush3.bf16.msra.mxu1 %v3607_v26 }
 0x42f   :  { %2763 = vmatprep.subr.mxu1 %v3567_v7 }
 0x4b5   :  { %v675_v49 = vpop.xlane.xlu0 %674 }
 0x4b9   :  { %v678_v50 = vpop.xlane.xlu0 %677 }
 0x4ba   :  { %v679_v51 = vmax.f32 %v675_v49, %v678_v50 }
 0x4bc   :  { %v680_v52 = vrot.slane %v679_v51, 4 }
 0x4be   :  { %v681_v53 = vmax.f32 %v679_v51, %v680_v52 }
 0x4c0   :  { %v682_v54 = vrot.slane %v681_v53, 2 }
 0x4c2   :  { %v683_v55 = vmax.f32 %v681_v53, %v682_v54 }
 0x4c4   :  { %v684_v56 = vrot.slane %v683_v55, 1 }
 0x4c6   :  { %v3691_v57 = vmax.f32 %v683_v55, %v684_v56 }
 0x4c8   :  { %vm686_vm3 = vcmp.lt.f32.partialorder %v3691_v57, 1e-12 }
 0x4fc   :  { %v2716_v1 = vpop.f32.mrb[8].mxu1 }
 0x4fd   :  { %v753_v11 = vpop.f32.mrb[9].mxu1 }
 0x4fe   :  { %2722 = vmatprep.mubr.msk.f32.mxu0 %vm169_vm1, %v753_v11 }
 0x4ff   :  { %2723 = vmatmul.mubr.msk.f32.vlgmr.msra.gmra.mrb[10].mxu0 %vm169_vm1, %v2716_v1 }
 0x500   :  { %v2719_v13 = vpop.f32.mrb[10].mxu1 }
 0x501   :  { %v763_v14 = vpop.f32.mrb[11].mxu1 }
 0x502   :  { %2725 = vmatprep.mubr.msk.f32.mxu0 %vm169_vm1, %v763_v14 }
 0x503   :  { %2726 = vmatmul.mubr.msk.f32.gmra.mrb[12].mxu0 %vm169_vm1, %v2719_v13 }
 0x504   :  { %2750 = vmatprep.mubr.msk.f32.mxu0 %vm486_vm2, %v3629_v44 }
 0x5d2   :  { %v2724_v15 = vpop.f32.mrb[10].mxu0 }
 0x5d3   :  { %v856_v16 = vadd.f32 %v2724_v15, %v3611_v28  ;;  %v850_v17 = vpop.f32.mrb[11].mxu0 }
 0x5d4   :  { %v851_v18 = vadd.f32 %v850_v17, %v3613_v29 }
 0x5d6   :  { %3035 = vtanh.f32 %v851_v18  ;;  %v2727_v19 = vpop.f32.mrb[12].mxu0 }
 0x5d7   :  { %3037 = vtanh.f32 %v856_v16  ;;  %v866_v20 = vadd.f32 %v2727_v19, %v3617_v34  ;;  %v860_v21 = vpop.f32.mrb[13].mxu0 }
 0x5d8   :  { %v861_v22 = vadd.f32 %v860_v21, %v3619_v35 }
 0x5da   :  { %3039 = vtanh.f32 %v861_v22 }
 0x5db   :  { %3041 = vtanh.f32 %v866_v20 }
 0x5e0   :  { %v3036_v24 = vpop.eup %3035 }
 0x5e1   :  { %v3038_v25 = vpop.eup %3037  ;;  %2736 = vmatprep.mubr.msk.f32.mxu1 %vm486_vm2, %v3036_v24 }
 0x5e2   :  { %2737 = vmatmul.mubr.msk.f32.vlgmr.msra.gmra.mrb[12].mxu1 %vm486_vm2, %v3038_v25 }
 0x5e3   :  { %2764 = vmatpush3.msra.mxu1 %v3567_v7 }
 0x5e4   :  { %v3040_v27 = vpop.eup %3039 }
 0x5e5   :  { %v3042_v30 = vpop.eup %3041  ;;  %2739 = vmatprep.mubr.msk.f32.mxu1 %vm486_vm2, %v3040_v27 }
 0x5e6   :  { %2740 = vmatmul.mubr.msk.f32.gmra.mrb[14].mxu1 %vm486_vm2, %v3042_v30 }
 0x6b5   :  { %v2738_v31 = vpop.f32.mrb[12].mxu1 }
 0x6b6   :  { %v957_v32 = vadd.f32 %v2738_v31, %v3633_v45  ;;  %v951_v33 = vpop.f32.mrb[13].mxu1 }
 0x6b7   :  { %v952_v36 = vadd.f32 %v3633_v45, %v951_v33 }
 0x6b8   :  { %3043 = vtanh.f32 %v957_v32 }
 0x6b9   :  { %3045 = vtanh.f32 %v952_v36  ;;  %v2741_v37 = vpop.f32.mrb[14].mxu1 }
 0x6ba   :  { %v967_v38 = vadd.f32 %v2741_v37, %v3633_v45  ;;  %v961_v39 = vpop.f32.mrb[15].mxu1 }
 0x6bb   :  { %v962_v40 = vadd.f32 %v3633_v45, %v961_v39 }
 0x6bc   :  { %3047 = vtanh.f32 %v967_v38 }
 0x6bd   :  { %3049 = vtanh.f32 %v962_v40 }
 0x6c2   :  { %v3044_v41 = vpop.eup %3043 }
 0x6c3   :  { %v3046_v42 = vpop.eup %3045 }
 0x6c4   :  { %v2930_v43 = vpack.c.bf16 %v3044_v41, %v3046_v42 }
 0x6c6   :  { %v3048_v46 = vpop.eup %3047  ;;  %2931 = vmatprep.subr.bf16.mxu0 %v2930_v43 }
 0x6c7   :  { %v3050_v47 = vpop.eup %3049  ;;  %2933 = vmatpush3.bf16.msra.mxu0 %v2930_v43 }
 0x6c8   :  { %v2934_v48 = vpack.c.bf16 %v3048_v46, %v3050_v47 }
 0x6ca   :  { %2935 = vmatprep.subr.bf16.mxu0 %v2934_v48 }
 0x6cb   :  { %2937 = vmatpush3.bf16.msra.mxu0 %v2934_v48 }
 0x6ce   :  { %2751 = vmatmul.mubr.msk.f32.vlgmr.msra.gmra.mrb[14].mxu0 %vm486_vm2, %v3639_v60 }
 0x6cf   :  { %2757 = vmatprep.mubr.msk.f32.mxu0 %vm287_vm0, %v3561_v2 }
 0x7a1   :  { %v2752_v58 = vpop.f32.mrb[14].mxu0 }
 0x7a2   :  { %v1050_v59 = vsub.f32 %v2752_v58, %v3645_v61  ;;  %v3698_v63 = vsel %vm686_vm3, %v3645_v61, %v2752_v58  ;;  %v1040_v3 = vpop.f32.mrb[15].mxu0 }
 0x7a3   :  { %v1049_v4 = vsub.f32 %v1040_v3, %v3647_v62  ;;  %v3704_v5 = vsel %vm686_vm3, %v3647_v62, %v1040_v3 }
 0x7a4   :  { %v2938_v6 = vpack.c.bf16 %v3698_v63, %v3704_v5  ;;  %v1052_v0 = vmul.f32 %v1050_v59, %v1050_v59 }
 0x7a5   :  { %v1051_v9 = vmul.f32 %v1049_v4, %v1049_v4 }
 0x7a6   :  { %2939 = vmatprep.subr.bf16.mxu0 %v2938_v6  ;;  %v1056_v61 = vsel %vm169_vm1, %v1052_v0, 0.0 }
 0x7a7   :  { %2941 = vmatpush3.bf16.msra.mxu0 %v2938_v6  ;;  %v1053_v1 = vsel %vm169_vm1, %v1051_v9, 0.0 }
 0x7a8   :  { %1054 = vadd.xlane.f32.xlu1 %v1053_v1  ;;  %2943 = vmatprep.subr.bf16.mxu0 %v3597_v23 }
 0x7aa   :  { %2758 = vmatmul.mubr.msk.f32.vlgmr.msra.gmra.mrb[16].mxu0 %vm287_vm0, %v3569_v8 }
 0x7ab   :  { %2760 = vmatprep.mubr.msk.f32.mxu0 %vm287_vm0, %v3571_v10  ;;  %2945 = vmatpush3.bf16.msra.mxu0 %v3597_v23 }
 0x7ac   :  { %1057 = vadd.xlane.f32.xlu1 %v1056_v61  ;;  %2947 = vmatprep.subr.bf16.mxu0 %v3607_v26 }
 0x7ae   :  { %2761 = vmatmul.mubr.msk.f32.gmra.mrb[18].mxu0 %vm287_vm0, %v3581_v12 }
 0x7af   :  { %2949 = vmatpush3.bf16.msra.mxu0 %v3607_v26 }
 0x7b0   :  { %2806 = vmatprep.subr.mxu0 %v3567_v7 }
 0x835   :  { %v1055_v49 = vpop.xlane.xlu1 %1054 }
 0x839   :  { %v1058_v50 = vpop.xlane.xlu1 %1057 }
 0x83a   :  { %v1059_v51 = vmax.f32 %v1055_v49, %v1058_v50 }
 0x83c   :  { %v1060_v52 = vrot.slane %v1059_v51, 4 }
 0x83e   :  { %v1061_v53 = vmax.f32 %v1059_v51, %v1060_v52 }
 0x840   :  { %v1062_v54 = vrot.slane %v1061_v53, 2 }
 0x842   :  { %v1063_v55 = vmax.f32 %v1061_v53, %v1062_v54 }
 0x844   :  { %v1064_v56 = vrot.slane %v1063_v55, 1 }
 0x846   :  { %v1065_v58 = vmax.f32 %v1063_v55, %v1064_v56 }
 0x848   :  { %vm1072_vm4 = vcmp.lt.f32.partialorder %v1065_v58, 1e-12 }
 0x849   :  { %vm3746_vm5 = vmor %vm686_vm3, %vm1072_vm4 }
 0x87d   :  { %v2759_v62 = vpop.f32.mrb[16].mxu0 }
 0x87e   :  { %v1140_v11 = vpop.f32.mrb[17].mxu0 }
 0x87f   :  { %2765 = vmatprep.mubr.msk.f32.mxu1 %vm169_vm1, %v1140_v11 }
 0x880   :  { %2766 = vmatmul.mubr.msk.f32.vlgmr.msra.gmra.mrb[16].mxu1 %vm169_vm1, %v2759_v62 }
 0x881   :  { %v2762_v13 = vpop.f32.mrb[18].mxu0 }
 0x882   :  { %v1150_v14 = vpop.f32.mrb[19].mxu0 }
 0x883   :  { %2768 = vmatprep.mubr.msk.f32.mxu1 %vm169_vm1, %v1150_v14 }
 0x884   :  { %2769 = vmatmul.mubr.msk.f32.gmra.mrb[18].mxu1 %vm169_vm1, %v2762_v13 }
 0x885   :  { %2793 = vmatprep.mubr.msk.f32.mxu1 %vm486_vm2, %v3629_v44 }
 0x953   :  { %v2767_v15 = vpop.f32.mrb[16].mxu1 }
 0x954   :  { %v1243_v16 = vadd.f32 %v2767_v15, %v3611_v28  ;;  %v1237_v17 = vpop.f32.mrb[17].mxu1 }
 0x955   :  { %v1238_v18 = vadd.f32 %v1237_v17, %v3613_v29 }
 0x957   :  { %3051 = vtanh.f32 %v1238_v18  ;;  %v2770_v19 = vpop.f32.mrb[18].mxu1 }
 0x958   :  { %3053 = vtanh.f32 %v1243_v16  ;;  %v1253_v20 = vadd.f32 %v2770_v19, %v3617_v34  ;;  %v1247_v21 = vpop.f32.mrb[19].mxu1 }
 0x959   :  { %v1248_v22 = vadd.f32 %v1247_v21, %v3619_v35 }
 0x95b   :  { %3055 = vtanh.f32 %v1248_v22 }
 0x95c   :  { %3057 = vtanh.f32 %v1253_v20 }
 0x961   :  { %v3052_v24 = vpop.eup %3051 }
 0x962   :  { %v3054_v25 = vpop.eup %3053  ;;  %2779 = vmatprep.mubr.msk.f32.mxu0 %vm486_vm2, %v3052_v24 }
 0x963   :  { %2780 = vmatmul.mubr.msk.f32.vlgmr.msra.gmra.mrb[20].mxu0 %vm486_vm2, %v3054_v25 }
 0x964   :  { %2807 = vmatpush3.msra.mxu0 %v3567_v7 }
 0x965   :  { %v3056_v27 = vpop.eup %3055 }
 0x966   :  { %v3058_v30 = vpop.eup %3057  ;;  %2782 = vmatprep.mubr.msk.f32.mxu0 %vm486_vm2, %v3056_v27 }
 0x967   :  { %2783 = vmatmul.mubr.msk.f32.gmra.mrb[22].mxu0 %vm486_vm2, %v3058_v30 }
 0xa36   :  { %v2781_v31 = vpop.f32.mrb[20].mxu0 }
 0xa37   :  { %v1344_v32 = vadd.f32 %v2781_v31, %v3633_v45  ;;  %v1338_v33 = vpop.f32.mrb[21].mxu0 }
 0xa38   :  { %v1339_v36 = vadd.f32 %v3633_v45, %v1338_v33 }
 0xa39   :  { %3059 = vtanh.f32 %v1344_v32 }
 0xa3a   :  { %3061 = vtanh.f32 %v1339_v36  ;;  %v2784_v37 = vpop.f32.mrb[22].mxu0 }
 0xa3b   :  { %v1354_v38 = vadd.f32 %v2784_v37, %v3633_v45  ;;  %v1348_v39 = vpop.f32.mrb[23].mxu0 }
 0xa3c   :  { %v1349_v40 = vadd.f32 %v3633_v45, %v1348_v39 }
 0xa3d   :  { %3063 = vtanh.f32 %v1354_v38 }
 0xa3e   :  { %3065 = vtanh.f32 %v1349_v40 }
 0xa43   :  { %v3060_v41 = vpop.eup %3059 }
 0xa44   :  { %v3062_v42 = vpop.eup %3061 }
 0xa45   :  { %v2950_v43 = vpack.c.bf16 %v3060_v41, %v3062_v42 }
 0xa47   :  { %v3064_v46 = vpop.eup %3063  ;;  %2951 = vmatprep.subr.bf16.mxu1 %v2950_v43 }
 0xa48   :  { %v3066_v47 = vpop.eup %3065  ;;  %2953 = vmatpush3.bf16.msra.mxu1 %v2950_v43 }
 0xa49   :  { %v2954_v48 = vpack.c.bf16 %v3064_v46, %v3066_v47 }
 0xa4b   :  { %2955 = vmatprep.subr.bf16.mxu1 %v2954_v48 }
 0xa4c   :  { %2957 = vmatpush3.bf16.msra.mxu1 %v2954_v48 }
 0xa4f   :  { %2794 = vmatmul.mubr.msk.f32.vlgmr.msra.gmra.mrb[20].mxu1 %vm486_vm2, %v3639_v60 }
 0xa50   :  { %2800 = vmatprep.mubr.msk.f32.mxu1 %vm287_vm0, %v3561_v2 }
 0xb22   :  { %v2795_v3 = vpop.f32.mrb[20].mxu1 }
 0xb23   :  { %v1437_v4 = vsub.f32 %v2795_v3, %v3698_v63  ;;  %v3754_v6 = vsel %vm3746_vm5, %v3698_v63, %v2795_v3  ;;  %v1427_v9 = vpop.f32.mrb[21].mxu1 }
 0xb24   :  { %v1436_v0 = vsub.f32 %v1427_v9, %v3704_v5  ;;  %v3760_v1 = vsel %vm3746_vm5, %v3704_v5, %v1427_v9 }
 0xb25   :  { %v1439_v61 = vmul.f32 %v1437_v4, %v1437_v4  ;;  %v2958_v62 = vpack.c.bf16 %v3754_v6, %v3760_v1 }
 0xb26   :  { %v1438_v11 = vmul.f32 %v1436_v0, %v1436_v0 }
 0xb27   :  { %2959 = vmatprep.subr.bf16.mxu1 %v2958_v62  ;;  %v1443_v13 = vsel %vm169_vm1, %v1439_v61, 0.0 }
 0xb28   :  { %1444 = vadd.xlane.f32.xlu1 %v1443_v13  ;;  %2961 = vmatpush3.bf16.msra.mxu1 %v2958_v62  ;;  %v1440_v63 = vsel %vm169_vm1, %v1438_v11, 0.0 }
 0xb29   :  { %1441 = vadd.xlane.f32.xlu0 %v1440_v63  ;;  %2963 = vmatprep.subr.bf16.mxu1 %v3597_v23 }
 0xb2b   :  { %2801 = vmatmul.mubr.msk.f32.vlgmr.msra.gmra.mrb[22].mxu1 %vm287_vm0, %v3569_v8 }
 0xb2c   :  { %2803 = vmatprep.mubr.msk.f32.mxu1 %vm287_vm0, %v3571_v10  ;;  %2965 = vmatpush3.bf16.msra.mxu1 %v3597_v23 }
 0xb2d   :  { %2967 = vmatprep.subr.bf16.mxu1 %v3607_v26 }
 0xb2f   :  { %2804 = vmatmul.mubr.msk.f32.gmra.mrb[24].mxu1 %vm287_vm0, %v3581_v12 }
 0xb30   :  { %2969 = vmatpush3.bf16.msra.mxu1 %v3607_v26 }
 0xb31   :  { %2849 = vmatprep.subr.mxu1 %v3567_v7 }
 0xbb5   :  { %v1445_v50 = vpop.xlane.xlu1 %1444 }
 0xbb6   :  { %v1442_v51 = vpop.xlane.xlu0 %1441 }
 0xbb7   :  { %v1446_v52 = vmax.f32 %v1442_v51, %v1445_v50 }
 0xbb9   :  { %v1447_v53 = vrot.slane %v1446_v52, 4 }
 0xbbb   :  { %v1448_v54 = vmax.f32 %v1446_v52, %v1447_v53 }
 0xbbd   :  { %v1449_v55 = vrot.slane %v1448_v54, 2 }
 0xbbf   :  { %v1450_v56 = vmax.f32 %v1448_v54, %v1449_v55 }
 0xbc1   :  { %v1451_v58 = vrot.slane %v1450_v56, 1 }
 0xbc3   :  { %v1452_v3 = vmax.f32 %v1450_v56, %v1451_v58 }
 0xbc5   :  { %vm1459_vm6 = vcmp.lt.f32.partialorder %v1452_v3, 1e-12  ;;  %v2216_v3 = vld [vmem:[#allocation14] sm:$0xff] }
 0xbc6   :  { %vm3802_vm7 = vmor %vm3746_vm5, %vm1459_vm6 }
 0xbfe   :  { %v2802_v5 = vpop.f32.mrb[22].mxu1 }
 0xbff   :  { %v1527_v14 = vpop.f32.mrb[23].mxu1 }
 0xc00   :  { %2808 = vmatprep.mubr.msk.f32.mxu0 %vm169_vm1, %v1527_v14 }
 0xc01   :  { %2809 = vmatmul.mubr.msk.f32.vlgmr.msra.gmra.mrb[24].mxu0 %vm169_vm1, %v2802_v5 }
 0xc02   :  { %v2805_v15 = vpop.f32.mrb[24].mxu1 }
 0xc03   :  { %v1537_v16 = vpop.f32.mrb[25].mxu1 }
 0xc04   :  { %2811 = vmatprep.mubr.msk.f32.mxu0 %vm169_vm1, %v1537_v16 }
 0xc05   :  { %2812 = vmatmul.mubr.msk.f32.gmra.mrb[26].mxu0 %vm169_vm1, %v2805_v15 }
 0xc06   :  { %2836 = vmatprep.mubr.msk.f32.mxu0 %vm486_vm2, %v3629_v44 }
 0xcd4   :  { %v2810_v17 = vpop.f32.mrb[24].mxu0 }
 0xcd5   :  { %v1630_v18 = vadd.f32 %v2810_v17, %v3611_v28  ;;  %v1624_v19 = vpop.f32.mrb[25].mxu0 }
 0xcd6   :  { %v1625_v20 = vadd.f32 %v1624_v19, %v3613_v29 }
 0xcd8   :  { %3067 = vtanh.f32 %v1625_v20  ;;  %v2813_v21 = vpop.f32.mrb[26].mxu0  ;;  %v3350_v20 = vmov 1  }
 0xcd9   :  { %3069 = vtanh.f32 %v1630_v18  ;;  %v1640_v22 = vadd.f32 %v2813_v21, %v3617_v34  ;;  %v1634_v24 = vpop.f32.mrb[27].mxu0 }
 0xcda   :  { %v1635_v25 = vadd.f32 %v1634_v24, %v3619_v35 }
 0xcdc   :  { %3071 = vtanh.f32 %v1635_v25 }
 0xcdd   :  { %3073 = vtanh.f32 %v1640_v22 }
 0xce2   :  { %v3068_v27 = vpop.eup %3067 }
 0xce3   :  { %v3070_v30 = vpop.eup %3069  ;;  %2822 = vmatprep.mubr.msk.f32.mxu1 %vm486_vm2, %v3068_v27 }
 0xce4   :  { %2823 = vmatmul.mubr.msk.f32.vlgmr.msra.gmra.mrb[26].mxu1 %vm486_vm2, %v3070_v30 }
 0xce5   :  { %2850 = vmatpush3.msra.mxu1 %v3567_v7 }
 0xce6   :  { %v3072_v31 = vpop.eup %3071 }
 0xce7   :  { %v3074_v32 = vpop.eup %3073  ;;  %2825 = vmatprep.mubr.msk.f32.mxu1 %vm486_vm2, %v3072_v31 }
 0xce8   :  { %2826 = vmatmul.mubr.msk.f32.gmra.mrb[28].mxu1 %vm486_vm2, %v3074_v32 }
 0xdb7   :  { %v2824_v33 = vpop.f32.mrb[26].mxu1 }
 0xdb8   :  { %v1731_v36 = vadd.f32 %v2824_v33, %v3633_v45  ;;  %v1725_v37 = vpop.f32.mrb[27].mxu1 }
 0xdb9   :  { %v1726_v38 = vadd.f32 %v3633_v45, %v1725_v37 }
 0xdba   :  { %3075 = vtanh.f32 %v1731_v36 }
 0xdbb   :  { %3077 = vtanh.f32 %v1726_v38  ;;  %v2827_v39 = vpop.f32.mrb[28].mxu1 }
 0xdbc   :  { %v1741_v40 = vadd.f32 %v2827_v39, %v3633_v45  ;;  %v1735_v41 = vpop.f32.mrb[29].mxu1 }
 0xdbd   :  { %v1736_v7 = vadd.f32 %v3633_v45, %v1735_v41 }
 0xdbe   :  { %3079 = vtanh.f32 %v1741_v40 }
 0xdbf   :  { %3081 = vtanh.f32 %v1736_v7 }
 0xdc4   :  { %v3076_v42 = vpop.eup %3075 }
 0xdc5   :  { %v3078_v43 = vpop.eup %3077 }
 0xdc6   :  { %v2970_v46 = vpack.c.bf16 %v3076_v42, %v3078_v43 }
 0xdc8   :  { %v3080_v47 = vpop.eup %3079  ;;  %2971 = vmatprep.subr.bf16.mxu0 %v2970_v46 }
 0xdc9   :  { %v3082_v48 = vpop.eup %3081  ;;  %2973 = vmatpush3.bf16.msra.mxu0 %v2970_v46 }
 0xdca   :  { %v2974_v49 = vpack.c.bf16 %v3080_v47, %v3082_v48 }
 0xdcc   :  { %2975 = vmatprep.subr.bf16.mxu0 %v2974_v49 }
 0xdcd   :  { %2977 = vmatpush3.bf16.msra.mxu0 %v2974_v49 }
 0xdd0   :  { %2837 = vmatmul.mubr.msk.f32.vlgmr.msra.gmra.mrb[28].mxu0 %vm486_vm2, %v3639_v60 }
 0xdd1   :  { %2843 = vmatprep.mubr.msk.f32.mxu0 %vm287_vm0, %v3561_v2 }
 0xea3   :  { %v2838_v9 = vpop.f32.mrb[28].mxu0 }
 0xea4   :  { %v1824_v0 = vsub.f32 %v2838_v9, %v3754_v6  ;;  %v3810_v2 = vsel %vm3802_vm7, %v3754_v6, %v2838_v9  ;;  %v1814_v61 = vpop.f32.mrb[29].mxu0 }
 0xea5   :  { %v1823_v62 = vsub.f32 %v1814_v61, %v3760_v1  ;;  %v3816_v11 = vsel %vm3802_vm7, %v3760_v1, %v1814_v61  ;;  %v2318_v61 = vld [vmem:[%s3920_s11 + $0x8] sm:$0xff] }
 0xea6   :  { %v1826_v13 = vmul.f32 %v1824_v0, %v1824_v0  ;;  %v2978_v63 = vpack.c.bf16 %v3810_v2, %v3816_v11 }
 0xea7   :  { %v1825_v5 = vmul.f32 %v1823_v62, %v1823_v62  ;;  %v2319_v62 = vld [vmem:[%s3920_s11 + $0x10] sm:$0xff] }
 0xea8   :  { %2979 = vmatprep.subr.bf16.mxu0 %v2978_v63  ;;  %v1830_v14 = vsel %vm169_vm1, %v1826_v13, 0.0 }
 0xea9   :  { %1831 = vadd.xlane.f32.xlu1 %v1830_v14  ;;  %2981 = vmatpush3.bf16.msra.mxu0 %v2978_v63  ;;  %v1827_v6 = vsel %vm169_vm1, %v1825_v5, 0.0  ;;  %v2512_v63 = vld [vmem:[#allocation16] ss:$0 sm:$0xff] }
 0xeaa   :  { %1828 = vadd.xlane.f32.xlu0 %v1827_v6  ;;  %2983 = vmatprep.subr.bf16.mxu0 %v3597_v23 }
 0xeac   :  { %2844 = vmatmul.mubr.msk.f32.vlgmr.msra.gmra.mrb[30].mxu0 %vm287_vm0, %v3569_v8  ;;  %v1070_v8 = vsel %vm686_vm3, 0, %v3350_v20 }
 0xead   :  { %2846 = vmatprep.mubr.msk.f32.mxu0 %vm287_vm0, %v3571_v10  ;;  %2985 = vmatpush3.bf16.msra.mxu0 %v3597_v23  ;;  %v1457_v23 = vsel %vm3746_vm5, 0, %v3350_v20  ;;  %v1071_v22 = vadd.s32 1, %v1070_v8 }
 0xeae   :  { %2987 = vmatprep.subr.bf16.mxu0 %v3607_v26 }
 0xeb0   :  { %2847 = vmatmul.mubr.msk.f32.gmra.mrb[32].mxu0 %vm287_vm0, %v3581_v12  ;;  %v1844_v12 = vsel %vm3802_vm7, 0, %v3350_v20 }
 0xeb1   :  { %2989 = vmatpush3.bf16.msra.mxu0 %v3607_v26  ;;  %v1458_v26 = vadd.s32 %v1457_v23, %v1071_v22 }
 0xeb3   :  { %v1845_v57 = vadd.s32 %v1844_v12, %v1458_v26 }
 0xf36   :  { %v1832_v1 = vpop.xlane.xlu1 %1831 }
 0xf37   :  { %v1829_v15 = vpop.xlane.xlu0 %1828 }
 0xf38   :  { %v1833_v16 = vmax.f32 %v1829_v15, %v1832_v1 }
 0xf3a   :  { %v1834_v17 = vrot.slane %v1833_v16, 4 }
 0xf3c   :  { %v1835_v18 = vmax.f32 %v1833_v16, %v1834_v17 }
 0xf3e   :  { %v1836_v19 = vrot.slane %v1835_v18, 2 }
 0xf40   :  { %v1837_v10 = vmax.f32 %v1835_v18, %v1836_v19 }
 0xf42   :  { %v1838_v21 = vrot.slane %v1837_v10, 1 }
 0xf44   :  { %v1839_v24 = vmax.f32 %v1837_v10, %v1838_v21 }
 0xf46   :  { %vm1846_vm8 = vcmp.lt.f32.partialorder %v1839_v24, 1e-12 }
 0xf47   :  { %vm3840_vm9 = vmor %vm3802_vm7, %vm1846_vm8 }
 0xf48   :  { %v2214_v27 = vsel %vm3840_vm9, 0, %v3350_v20 }
 0xf49   :  { %v2215_v59 = vadd.s32 %v2214_v27, %v1845_v57 }
 0xf4b   :  { %2412 = vst.msk [vmem:[#allocation17] sm:$0x1] %vm2411_vm10, %v2215_v59 }
 0xf7f   :  { %v2845_v30 = vpop.f32.mrb[30].mxu0 }
 0xf80   :  { %v1914_v31 = vpop.f32.mrb[31].mxu0 }
 0xf81   :  { %2851 = vmatprep.mubr.msk.f32.mxu1 %vm169_vm1, %v1914_v31 }
 0xf82   :  { %2852 = vmatmul.mubr.msk.f32.vlgmr.msra.gmra.mrb[30].mxu1 %vm169_vm1, %v2845_v30 }
 0xf83   :  { %v2848_v32 = vpop.f32.mrb[32].mxu0 }
 0xf84   :  { %v1924_v33 = vpop.f32.mrb[33].mxu0 }
 0xf85   :  { %2854 = vmatprep.mubr.msk.f32.mxu1 %vm169_vm1, %v1924_v33 }
 0xf86   :  { %2855 = vmatmul.mubr.msk.f32.gmra.mrb[32].mxu1 %vm169_vm1, %v2848_v32 }
 0xf87   :  { %2879 = vmatprep.mubr.msk.f32.mxu1 %vm486_vm2, %v3629_v44 }
0x1055   :  { %v2853_v36 = vpop.f32.mrb[30].mxu1 }
0x1056   :  { %v2017_v37 = vadd.f32 %v2853_v36, %v3611_v28  ;;  %v2011_v38 = vpop.f32.mrb[31].mxu1 }
0x1057   :  { %v2012_v39 = vadd.f32 %v2011_v38, %v3613_v29 }
0x1059   :  { %3083 = vtanh.f32 %v2012_v39  ;;  %v2856_v40 = vpop.f32.mrb[32].mxu1 }
0x105a   :  { %3085 = vtanh.f32 %v2017_v37  ;;  %v2027_v41 = vadd.f32 %v2856_v40, %v3617_v34  ;;  %v2021_v7 = vpop.f32.mrb[33].mxu1 }
0x105b   :  { %v2022_v42 = vadd.f32 %v2021_v7, %v3619_v35 }
0x105d   :  { %3087 = vtanh.f32 %v2022_v42 }
0x105e   :  { %3089 = vtanh.f32 %v2027_v41 }
0x1063   :  { %v3084_v43 = vpop.eup %3083 }
0x1064   :  { %v3086_v46 = vpop.eup %3085  ;;  %2865 = vmatprep.mubr.msk.f32.mxu0 %vm486_vm2, %v3084_v43 }
0x1065   :  { %2866 = vmatmul.mubr.msk.f32.vlgmr.msra.gmra.mrb[34].mxu0 %vm486_vm2, %v3086_v46 }
0x1067   :  { %v3088_v28 = vpop.eup %3087 }
0x1068   :  { %v3090_v44 = vpop.eup %3089  ;;  %2868 = vmatprep.mubr.msk.f32.mxu0 %vm486_vm2, %v3088_v28 }
0x1069   :  { %2869 = vmatmul.mubr.msk.f32.gmra.mrb[36].mxu0 %vm486_vm2, %v3090_v44 }
0x1138   :  { %v2867_v29 = vpop.f32.mrb[34].mxu0 }
0x1139   :  { %v2118_v34 = vadd.f32 %v2867_v29, %v3633_v45  ;;  %v2112_v47 = vpop.f32.mrb[35].mxu0 }
0x113a   :  { %v2113_v35 = vadd.f32 %v3633_v45, %v2112_v47 }
0x113b   :  { %3091 = vtanh.f32 %v2118_v34 }
0x113c   :  { %3093 = vtanh.f32 %v2113_v35  ;;  %v2870_v48 = vpop.f32.mrb[36].mxu0 }
0x113d   :  { %v2128_v49 = vadd.f32 %v2870_v48, %v3633_v45  ;;  %v2122_v50 = vpop.f32.mrb[37].mxu0 }
0x113e   :  { %v2123_v51 = vadd.f32 %v3633_v45, %v2122_v50 }
0x113f   :  { %3095 = vtanh.f32 %v2128_v49 }
0x1140   :  { %3097 = vtanh.f32 %v2123_v51 }
0x1145   :  { %v3092_v52 = vpop.eup %3091 }
0x1146   :  { %v3094_v53 = vpop.eup %3093 }
0x1147   :  { %v2990_v54 = vpack.c.bf16 %v3092_v52, %v3094_v53 }
0x1149   :  { %v3096_v55 = vpop.eup %3095  ;;  %2991 = vmatprep.subr.bf16.mxu1 %v2990_v54 }
0x114a   :  { %v3098_v56 = vpop.eup %3097  ;;  %2993 = vmatpush3.bf16.msra.mxu1 %v2990_v54 }
0x114b   :  { %v2994_v58 = vpack.c.bf16 %v3096_v55, %v3098_v56 }
0x114d   :  { %2995 = vmatprep.subr.bf16.mxu1 %v2994_v58 }
0x114e   :  { %2997 = vmatpush3.bf16.msra.mxu1 %v2994_v58 }
0x114f   :  { %2882 = vmatprep.subr.mxu1 %v2216_v3 }
0x1151   :  { %2880 = vmatmul.mubr.msk.f32.vlgmr.msra.gmra.mrb[34].mxu1 %vm486_vm2, %v3639_v60  ;;  %v2317_v60 = vld [vmem:[%s3920_s11] sm:$0xff] }
0x1152   :  { %2883 = vmatpush3.msra.mxu1 %v2216_v3 }
0x1224   :  { %v2881_v4 = vpop.f32.mrb[34].mxu1 }
0x1225   :  { %v2201_v45 = vpop.f32.mrb[35].mxu1  ;;  %v2213_v0 = vsel %vm3840_vm9, %v3810_v2, %v2881_v4  ;;  %v2320_v2 = vld [vmem:[%s3920_s11 + $0x18] sm:$0xff]  ;;  %s3351_s11 = smov [#allocation17]  }
0x1226   :  { %v2212_v9 = vsel %vm3840_vm9, %v3816_v11, %v2201_v45  ;;  %v2998_v11 = vpack.c.bf16 %v2318_v61, %v2317_v60  ;;  %v3002_v13 = vpack.c.bf16 %v2320_v2, %v2319_v62  ;;  %s2421_s3 = sshll.u32 %s3351_s11, 4  ;;  %s2422_s3 = int_to_ptr.vmem [resolvable:$true] %s2421_s3 }
0x1227   :  { %2884 = vmatprep.mubr.msk.f32.mxu1 %vm169_vm1, %v2212_v9  ;;  %s3305_s16 = scalar_lea.vmem %s2422_s3, 16  ;;  %s3309_s24 = scalar_lea.vmem %s2422_s3, 32 }
0x1228   :  { %2885 = vmatmul.mubr.msk.f32.vlgmr.msra.gmra.mrb[36].mxu1 %vm169_vm1, %v2213_v0  ;;  %2999 = vmatprep.subr.bf16.mxu0 %v2998_v11  ;;  %p3306_p2 = scmp.ne.s32.totalorder %s2422_s3, %s3305_s16  ;;  %p3310_p3 = scmp.lt.s32.totalorder %s2422_s3, %s2422_s3 }
0x1229   :  { %3001 = vmatpush3.bf16.msra.mxu0 %v2998_v11  ;;  %p3311_p4 = scmp.lt.s32.totalorder %s3309_s24, %s3305_s16 }
0x122a   :  { %3003 = vmatprep.subr.bf16.mxu0 %v3002_v13 }
0x122b   :  { %p3312_p5 = por %p3311_p4, %p3310_p3 }
0x122d   :  { %3005 = vmatpush3.bf16.msra.mxu0 %v3002_v13  ;;  %p3313_p6 = pnand %p3312_p5, %p3306_p2 }
0x12fb   :  { %v2886_v5 = vpop.f32.mrb[36].mxu1 }
0x12fc   :  { %v2302_v14 = vadd.f32 %v2886_v5, %v2512_v63  ;;  %v2296_v6 = vpop.f32.mrb[37].mxu1 }
0x12fd   :  { %v2297_v1 = vadd.f32 %v2512_v63, %v2296_v6 }
0x12fe   :  { %v2516_v15 = vmul.f32 -1.442695, %v2302_v14 }
0x12ff   :  { %v2515_v16 = vmul.f32 -1.442695, %v2297_v1 }
0x1300   :  { %3099 = vpow2.f32 %v2516_v15 }
0x1301   :  { %3101 = vpow2.f32 %v2515_v16 }
0x130a   :  { %v3100_v17 = vpop.eup %3099 }
0x130b   :  { %v3102_v18 = vpop.eup %3101  ;;  %v2312_v19 = vadd.f32 1.0, %v3100_v17 }
0x130c   :  { %v2311_v20 = vadd.f32 1.0, %v3102_v18 }
0x130e   :  { %3103 = vrcp.f32 %v2311_v20 }
0x130f   :  { %3105 = vrcp.f32 %v2312_v19 }
0x1318   :  { %v3104_v8 = vpop.eup %3103 }
0x1319   :  { %v3106_v10 = vpop.eup %3105  ;;  %2895 = vmatprep.mubr.msk.f32.mxu0 %vm486_vm2, %v3104_v8 }
0x131a   :  { %2896 = vmatmul.mubr.msk.f32.vlgmr.msra.gmra.mrb[38].mxu0 %vm486_vm2, %v3106_v10 }
0x131b   :  { %3316 = shalt.err (!%p3313_p6)
}
0x131c   :  { %s3317_s25 = scalar_lea.hbm %s3923_s14, 16 }
0x131d   :  { %p3318_p7 = scmp.ne.s32.totalorder %s3923_s14, %s3317_s25  ;;  %p3321_p8 = scmp.lt.u32.totalorder %s3317_s25, %s3923_s14 }
0x131f   :  { %p3323_p9 = pnand %p3321_p8, %p3318_p7 }
0x1321   :  { %3326 = shalt.err (!%p3323_p9)
}
0x1322   :  { %2424 = dma.vmem_to_hbm [thread:$0]  %s2422_s3, 16, %s3923_s14, [#allocation4]   ;;  %v2517_v23 = vld [vmem:[%s3921_s12] ss:$0 sm:$0xff] }
0x13ed   :  { %v2897_v21 = vpop.f32.mrb[38].mxu0 }
0x13ee   :  { %v2406_v22 = vadd.f32 %v2897_v21, %v2517_v23  ;;  %v2400_v24 = vpop.f32.mrb[39].mxu0 }
0x13ef   :  { %v2401_v12 = vadd.f32 %v2517_v23, %v2400_v24 }
0x13f0   :  { %2410 = vst [vmem:[%s3922_s13 + $0x8] sm:$0xff] %v2406_v22 }
0x13f1   :  { %2409 = vst [vmem:[%s3922_s13] sm:$0xff] %v2401_v12 }
0x13f2   :  { %3337 = dma.done.wait [#allocation4], 16  }
0x13f3   :  { %3338 = vsyncadd [#allocation4], 4294967280 }
0x13f4   :  { %2430 = vsyncpa [#allocation3], 1 }
0x13f5   :  { %2431 = vsyncpa [#allocation6], 1 }
0x13f6   :  { %2432 = vsyncpa [#allocation9], 1 }
0x13f7   :  { %2433 = vsyncpa [#allocation12], 1 }
0x13f8   :  { %2434 = vsyncpa [#allocation15], 1 }
0x13f9   :  { %2435 = vsyncpa [#allocation4], 1 }

</bundles_post_ra>
